<compile_context>
chip_gen: v7x
topology: tpu7x:2x2x1
jax: 0.10.0
libtpu: 0.0.40
codegen_flags: <defaults>
</compile_context>

<pallas_src>
import functools

import jax
import jax.numpy as jnp
from jax.experimental import pallas as pl
from jax.experimental.pallas import tpu as pltpu


def _detect_vmem_limit():
    """Scoped VMEM budget with ~25% headroom, per TPU generation."""
    cap = None
    try:
        info = pltpu.get_tpu_info()
        for name in ("vmem_capacity_bytes", "vmem_size_bytes", "vmem_bytes"):
            cap = getattr(info, name, None)
            if cap:
                break
    except Exception:
        cap = None
    if not cap:
        cap = 64 * 1024 * 1024          # conservative fallback (v7x-sized)
    return min(int(cap) * 3 // 4, 100 * 1024 * 1024)


_VMEM_LIMIT = _detect_vmem_limit()       # ~48 MiB on v7x, ~96 MiB on v5e/v6e
_BIG_VMEM = _VMEM_LIMIT >= 80 * 1024 * 1024


def _fit_tile(dim, max_tile, align):
    """Largest tile <= max_tile that is either the full dim or an `align`-
    multiple divisor of dim (keeps the (8,128) BlockSpec rule satisfied).
    Falling back to the full dim is always shape-legal; callers pick max_tile
    per-generation so the block also fits the VMEM budget."""
    if dim <= max_tile:
        return dim
    t = (max_tile // align) * align
    while t >= align:
        if dim % t == 0:
            return t
        t -= align
    return dim


def _cparams(semantics):
    return pltpu.CompilerParams(dimension_semantics=semantics,
                                vmem_limit_bytes=_VMEM_LIMIT)


def _act(name, x):
    if name == "none":
        return x
    if name == "tanh":
        return jnp.tanh(x)
    if name == "gelu":
        # TODO(synk): HF BERT default is exact erf-GELU; tanh approximation used here.
        c = jnp.float32(0.7978845608028654)  # sqrt(2/pi)
        return 0.5 * x * (1.0 + jnp.tanh(c * (x + 0.044715 * x * x * x)))
    raise ValueError(name)


def _ln(y, g, b, eps):
    mu = jnp.mean(y, axis=-1, keepdims=True)
    yc = y - mu
    var = jnp.mean(yc * yc, axis=-1, keepdims=True)
    inv = jax.lax.rsqrt(var + eps)
    return yc * inv * g + b


def _to_bf16(x):
    return x if x.dtype == jnp.bfloat16 else x.astype(jnp.bfloat16)


# ----------------------------- Pallas kernels -----------------------------

def _linear_full_kernel(x_ref, w_ref, b_ref, o_ref, *, act):
    """y = act(x @ w + b) with the whole weight resident in VMEM."""
    y = jnp.dot(_to_bf16(x_ref[...]), w_ref[...],
                preferred_element_type=jnp.float32) + b_ref[...]
    o_ref[...] = _act(act, y).astype(o_ref.dtype)


def _linear_tiled_kernel(x_ref, w_ref, b_ref, o_ref, acc_ref, *, act):
    """Fallback: K-tiled with f32 accumulator (used only if weight > budget)."""
    k = pl.program_id(2)

    @pl.when(k == 0)
    def _():
        acc_ref[...] = jnp.zeros_like(acc_ref)

    acc_ref[...] += jnp.dot(_to_bf16(x_ref[...]), w_ref[...],
                            preferred_element_type=jnp.float32)

    @pl.when(k == pl.num_programs(2) - 1)
    def _():
        y = acc_ref[...] + b_ref[...]
        o_ref[...] = _act(act, y).astype(o_ref.dtype)


def linear(x, w, b, act="none", out_dtype=jnp.float32, tm=None, tn=512, tk=512):
    """x:[M,K], w:[K,N] (bf16), b:[N] f32 -> act(x@w+b):[M,N] in out_dtype."""
    M, K = x.shape
    N = w.shape[1]
    if tm is None:
        tm = 512 if _BIG_VMEM else 256
    tm = _fit_tile(M, tm, 8)

    w_bytes = K * N * jnp.dtype(w.dtype).itemsize
    if 2 * w_bytes <= _VMEM_LIMIT // 3:
        # Full-weight path: no N/K tiling, x block DMA'd exactly once.
        return pl.pallas_call(
            functools.partial(_linear_full_kernel, act=act),
            grid=(M // tm,),
            in_specs=[pl.BlockSpec((tm, K), lambda i: (i, 0)),
                      pl.BlockSpec((K, N), lambda i: (0, 0)),
                      pl.BlockSpec((1, N), lambda i: (0, 0))],
            out_specs=pl.BlockSpec((tm, N), lambda i: (i, 0)),
            out_shape=jax.ShapeDtypeStruct((M, N), out_dtype),
            compiler_params=_cparams(("parallel",)),
        )(x, w, b.reshape(1, N))

    tn = _fit_tile(N, tn, 128)
    tk = _fit_tile(K, tk, 128)
    grid = (M // tm, N // tn, K // tk)
    return pl.pallas_call(
        functools.partial(_linear_tiled_kernel, act=act),
        grid=grid,
        in_specs=[pl.BlockSpec((tm, tk), lambda i, j, k: (i, k)),
                  pl.BlockSpec((tk, tn), lambda i, j, k: (k, j)),
                  pl.BlockSpec((1, tn), lambda i, j, k: (0, j))],
        out_specs=pl.BlockSpec((tm, tn), lambda i, j, k: (i, j)),
        out_shape=jax.ShapeDtypeStruct((M, N), out_dtype),
        scratch_shapes=[pltpu.VMEM((tm, tn), jnp.float32)],
        compiler_params=_cparams(("parallel", "parallel", "arbitrary")),
    )(x, w, b.reshape(1, N))


def _linear_res_ln_kernel(x_ref, w_ref, b_ref, r_ref, g_ref, be_ref, o_ref, *, eps):
    """y = LayerNorm(x @ w + b + residual); whole [H,H] weight resident."""
    y = jnp.dot(_to_bf16(x_ref[...]), w_ref[...],
                preferred_element_type=jnp.float32)
    y = y + b_ref[...] + r_ref[...].astype(jnp.float32)
    o_ref[...] = _ln(y, g_ref[...], be_ref[...], eps).astype(o_ref.dtype)


def linear_residual_ln(x, w, b, res, gamma, beta, eps=1e-12, tm=None):
    M, K = x.shape
    N = w.shape[1]
    if tm is None:
        tm = 512 if _BIG_VMEM else 256
    tm = _fit_tile(M, tm, 8)
    return pl.pallas_call(
        functools.partial(_linear_res_ln_kernel, eps=eps),
        grid=(M // tm,),
        in_specs=[pl.BlockSpec((tm, K), lambda i: (i, 0)),
                  pl.BlockSpec((K, N), lambda i: (0, 0)),
                  pl.BlockSpec((1, N), lambda i: (0, 0)),
                  pl.BlockSpec((tm, N), lambda i: (i, 0)),
                  pl.BlockSpec((1, N), lambda i: (0, 0)),
                  pl.BlockSpec((1, N), lambda i: (0, 0))],
        out_specs=pl.BlockSpec((tm, N), lambda i: (i, 0)),
        out_shape=jax.ShapeDtypeStruct((M, N), jnp.float32),
        compiler_params=_cparams(("parallel",)),
    )(x, w, b.reshape(1, N), res, gamma.reshape(1, N), beta.reshape(1, N))


def _ffn_res_ln_kernel(x_ref, w1_ref, b1_ref, w2_ref, b2_ref, g_ref, be_ref,
                       o_ref, acc_ref, *, eps):
    """Fused FFN: LN(gelu(x@w1+b1)@w2 + b2 + x). Tiled over the intermediate
    dim so the [M, I] intermediate never leaves VMEM; the x block index is
    constant over the I axis, so it stays resident (no re-DMA)."""
    j = pl.program_id(1)

    @pl.when(j == 0)
    def _():
        acc_ref[...] = jnp.zeros_like(acc_ref)

    h = jnp.dot(_to_bf16(x_ref[...]), w1_ref[...],
                preferred_element_type=jnp.float32) + b1_ref[...]
    h = _act("gelu", h)
    acc_ref[...] += jnp.dot(h.astype(jnp.bfloat16), w2_ref[...],
                            preferred_element_type=jnp.float32)

    @pl.when(j == pl.num_programs(1) - 1)
    def _():
        y = acc_ref[...] + b2_ref[...] + x_ref[...].astype(jnp.float32)
        o_ref[...] = _ln(y, g_ref[...], be_ref[...], eps).astype(o_ref.dtype)


def ffn_residual_ln(x, w1, b1, w2, b2, gamma, beta, eps=1e-12, tm=None, ti=None):
    M, H = x.shape
    I = w1.shape[1]
    if tm is None:
        tm = 512 if _BIG_VMEM else 256        # v7x: keep blocks under ~48 MiB
    tm = _fit_tile(M, tm, 8)
    if ti is None:
        ti = I if _BIG_VMEM else 1024         # v5e/v6e: full-width w1/w2 blocks
    ti = _fit_tile(I, ti, 128)
    grid = (M // tm, I // ti)
    return pl.pallas_call(
        functools.partial(_ffn_res_ln_kernel, eps=eps),
        grid=grid,
        in_specs=[pl.BlockSpec((tm, H), lambda i, j: (i, 0)),
                  pl.BlockSpec((H, ti), lambda i, j: (0, j)),
                  pl.BlockSpec((1, ti), lambda i, j: (0, j)),
                  pl.BlockSpec((ti, H), lambda i, j: (j, 0)),
                  pl.BlockSpec((1, H), lambda i, j: (0, 0)),
                  pl.BlockSpec((1, H), lambda i, j: (0, 0)),
                  pl.BlockSpec((1, H), lambda i, j: (0, 0))],
        out_specs=pl.BlockSpec((tm, H), lambda i, j: (i, 0)),
        out_shape=jax.ShapeDtypeStruct((M, H), jnp.float32),
        scratch_shapes=[pltpu.VMEM((tm, H), jnp.float32)],
        compiler_params=_cparams(("parallel", "arbitrary")),
    )(x, w1, b1.reshape(1, I), w2, b2.reshape(1, H),
      gamma.reshape(1, H), beta.reshape(1, H))


def _layernorm_kernel(x_ref, g_ref, b_ref, o_ref, *, eps):
    x = x_ref[...].astype(jnp.float32)
    o_ref[...] = _ln(x, g_ref[...], b_ref[...], eps).astype(o_ref.dtype)


def layernorm(x, g, b, eps=1e-12, tm=None):
    M, H = x.shape
    if tm is None:
        tm = 2048 if _BIG_VMEM else 1024
    tm = _fit_tile(M, tm, 8)
    return pl.pallas_call(
        functools.partial(_layernorm_kernel, eps=eps),
        grid=(M // tm,),
        in_specs=[pl.BlockSpec((tm, H), lambda i: (i, 0)),
                  pl.BlockSpec((1, H), lambda i: (0, 0)),
                  pl.BlockSpec((1, H), lambda i: (0, 0))],
        out_specs=pl.BlockSpec((tm, H), lambda i: (i, 0)),
        out_shape=jax.ShapeDtypeStruct((M, H), jnp.float32),
        compiler_params=_cparams(("parallel",)),
    )(x, g.reshape(1, H), b.reshape(1, H))


def _attention_kernel(qkv_ref, mask_ref, o_ref, *, num_heads, head_dim,
                      hidden, scale, tq):
    """One (batch row, q-block) per grid step; all heads per step. Heads are
    sliced from the fused [S, 3H] bf16 QKV slab (resident across q-blocks)
    and each head's context is stored directly into its o_ref lane slice —
    no concatenate / extra full-row copy."""
    qi = pl.program_id(1)
    q0 = pl.multiple_of(qi * tq, tq)
    mbias = mask_ref[0]                                   # (1, S) additive bias
    for h in range(num_heads):                            # static unroll
        lo = h * head_dim
        q = qkv_ref[0, pl.ds(q0, tq), lo:lo + head_dim]                  # bf16
        k = qkv_ref[0, :, hidden + lo:hidden + lo + head_dim]            # bf16
        v = qkv_ref[0, :, 2 * hidden + lo:2 * hidden + lo + head_dim]    # bf16
        # contract on dH of both operands -> no in-kernel transpose of K
        s = jax.lax.dot_general(q, k, (((1,), (1,)), ((), ())),
                                preferred_element_type=jnp.float32) * scale
        s = s + mbias                                     # broadcast over rows
        m = jnp.max(s, axis=-1, keepdims=True)
        p = jnp.exp(s - m)
        p = p * pl.reciprocal(jnp.sum(p, axis=-1, keepdims=True), approx=True)
        ctx = jnp.dot(p.astype(jnp.bfloat16), v,
                      preferred_element_type=jnp.float32)
        o_ref[0, :, lo:lo + head_dim] = ctx.astype(o_ref.dtype)


def attention(qkv, mask_bias, *, num_heads, tq=None):
    """qkv: [B, S, 3H] bf16; mask_bias: [B, 1, S] additive -> [B, S, H] bf16."""
    B, S, H3 = qkv.shape
    H = H3 // 3
    dH = H // num_heads
    scale = 1.0 / float(dH) ** 0.5
    if tq is None:
        tq = 256
    tq = _fit_tile(S, tq, 8)
    grid = (B, S // tq)
    return pl.pallas_call(
        functools.partial(_attention_kernel, num_heads=num_heads,
                          head_dim=dH, hidden=H, scale=scale, tq=tq),
        grid=grid,
        in_specs=[pl.BlockSpec((1, S, H3), lambda b, qi: (b, 0, 0)),
                  pl.BlockSpec((1, 1, S), lambda b, qi: (b, 0, 0))],
        out_specs=pl.BlockSpec((1, tq, H), lambda b, qi: (b, qi, 0)),
        out_shape=jax.ShapeDtypeStruct((B, S, H), jnp.bfloat16),
        compiler_params=_cparams(("parallel", "parallel")),
    )(qkv, mask_bias)


def _pool_head_kernel(x_ref, pw_ref, pb_ref, sw_ref, sb_ref, o_ref):
    """Fused pooler (tanh(cls @ Wp + bp)) + svm head in one tiny kernel."""
    pooled = jnp.tanh(jnp.dot(_to_bf16(x_ref[...]), pw_ref[...],
                              preferred_element_type=jnp.float32) + pb_ref[...])
    logits = jnp.dot(pooled.astype(jnp.bfloat16), sw_ref[...],
                     preferred_element_type=jnp.float32) + sb_ref[...]
    o_ref[...] = logits.astype(o_ref.dtype)


def pool_and_head(cls_tok, pool_w, pool_b, svm_w, svm_b):
    B, H = cls_tok.shape
    C = svm_w.shape[1]
    return pl.pallas_call(
        _pool_head_kernel,
        grid=(1,),
        in_specs=[pl.BlockSpec((B, H), lambda i: (0, 0)),
                  pl.BlockSpec((H, H), lambda i: (0, 0)),
                  pl.BlockSpec((1, H), lambda i: (0, 0)),
                  pl.BlockSpec((H, C), lambda i: (0, 0)),
                  pl.BlockSpec((1, C), lambda i: (0, 0))],
        out_specs=pl.BlockSpec((B, C), lambda i: (0, 0)),
        out_shape=jax.ShapeDtypeStruct((B, C), jnp.float32),
        compiler_params=_cparams(("arbitrary",)),
    )(cls_tok, pool_w, pool_b.reshape(1, H), svm_w, svm_b.reshape(1, C))


# ------------------------------ model (glue) ------------------------------

def init_params(key, cfg):
    H, I = cfg["hidden"], cfg["intermediate"]
    keys = iter(jax.random.split(key, 8 + cfg["layers"] * 8))

    def w(shape):
        return jax.random.normal(next(keys), shape, jnp.float32) * 0.02

    params = {
        "word_emb": w((cfg["vocab"], H)),
        "pos_emb": w((cfg["max_pos"], H)),
        "type_emb": w((cfg["type_vocab"], H)),
        "emb_ln_g": jnp.ones((H,), jnp.float32),
        "emb_ln_b": jnp.zeros((H,), jnp.float32),
        "pool_w": w((H, H)),
        "pool_b": jnp.zeros((H,), jnp.float32),
        "svm_w": w((H, cfg["num_classes"])),
        "svm_b": jnp.zeros((cfg["num_classes"],), jnp.float32),
        "layers": [],
    }
    for _ in range(cfg["layers"]):
        params["layers"].append({
            "wq": w((H, H)), "bq": jnp.zeros((H,), jnp.float32),
            "wk": w((H, H)), "bk": jnp.zeros((H,), jnp.float32),
            "wv": w((H, H)), "bv": jnp.zeros((H,), jnp.float32),
            "wo": w((H, H)), "bo": jnp.zeros((H,), jnp.float32),
            "w1": w((H, I)), "b1": jnp.zeros((I,), jnp.float32),
            "w2": w((I, H)), "b2": jnp.zeros((H,), jnp.float32),
            "ln1_g": jnp.ones((H,), jnp.float32),
            "ln1_b": jnp.zeros((H,), jnp.float32),
            "ln2_g": jnp.ones((H,), jnp.float32),
            "ln2_b": jnp.zeros((H,), jnp.float32),
        })
    return params


def prepare_params(params):
    """One-time weight prep hoisted out of the jitted forward: stack layers
    for lax.scan, fuse Q/K/V into one [H,3H] weight, cast MXU weights to bf16."""
    st = jax.tree_util.tree_map(lambda *xs: jnp.stack(xs, 0), *params["layers"])
    layers = {
        "wqkv": jnp.concatenate([st["wq"], st["wk"], st["wv"]], -1
                                ).astype(jnp.bfloat16),               # [L, H, 3H]
        "bqkv": jnp.concatenate([st["bq"], st["bk"], st["bv"]], -1),  # [L, 3H]
        "wo": st["wo"].astype(jnp.bfloat16), "bo": st["bo"],
        "w1": st["w1"].astype(jnp.bfloat16), "b1": st["b1"],
        "w2": st["w2"].astype(jnp.bfloat16), "b2": st["b2"],
        "ln1_g": st["ln1_g"], "ln1_b": st["ln1_b"],
        "ln2_g": st["ln2_g"], "ln2_b": st["ln2_b"],
    }
    return {
        "word_emb": params["word_emb"],
        "pos_emb": params["pos_emb"],
        "type_emb": params["type_emb"],
        "emb_ln_g": params["emb_ln_g"], "emb_ln_b": params["emb_ln_b"],
        "pool_w": params["pool_w"].astype(jnp.bfloat16),
        "pool_b": params["pool_b"],
        "svm_w": params["svm_w"].astype(jnp.bfloat16),
        "svm_b": params["svm_b"],
        "layers": layers,
    }


def mac_bert_cls_forward(pp, input_ids, token_type_ids, attention_mask, cfg):
    B, S = input_ids.shape
    H, nH = cfg["hidden"], cfg["heads"]

    if token_type_ids is None:                    # mirror the torch forward()
        token_type_ids = jnp.zeros_like(input_ids)

    # Embeddings (gathers are glue) + LayerNorm kernel.
    # TODO(synk): dropout layers omitted (eval-mode identity).
    emb = (pp["word_emb"][input_ids]
           + pp["pos_emb"][jnp.arange(S)][None, :, :]
           + pp["type_emb"][token_type_ids])
    x = layernorm(emb.reshape(B * S, H), pp["emb_ln_g"], pp["emb_ln_b"])

    mask_bias = ((1.0 - attention_mask.astype(jnp.float32)) * -10000.0
                 ).reshape(B, 1, S)

    def layer_step(x, p):
        qkv = linear(x, p["wqkv"], p["bqkv"], out_dtype=jnp.bfloat16)   # [B*S,3H] bf16
        ctx = attention(qkv.reshape(B, S, 3 * H), mask_bias, num_heads=nH)
        x = linear_residual_ln(ctx.reshape(B * S, H), p["wo"], p["bo"], x,
                               p["ln1_g"], p["ln1_b"])
        x = ffn_residual_ln(x, p["w1"], p["b1"], p["w2"], p["b2"],
                            p["ln2_g"], p["ln2_b"])
        return x, None

    x, _ = jax.lax.scan(layer_step, x, pp["layers"])

    cls_tok = x.reshape(B, S, H)[:, 0, :]                               # [B, H]
    logits = pool_and_head(cls_tok, pp["pool_w"], pp["pool_b"],
                           pp["svm_w"], pp["svm_b"])
    return logits                                  # sigmoid NOT applied (matches torch)


# --------------------------------- main ---------------------------------

if __name__ == "__main__":
    cfg = dict(vocab=100, hidden=32, heads=2, layers=2, intermediate=64,
               max_pos=16, type_vocab=2, num_classes=3)
    B, S = 2, 8

    key = jax.random.PRNGKey(0)
    k_param, k_ids = jax.random.split(key, 2)
    params = init_params(k_param, cfg)
    pp = prepare_params(params)                    # one-time, outside jit

    input_ids = jax.random.randint(k_ids, (B, S), 0, cfg["vocab"], jnp.int32)
    token_type_ids = jnp.zeros((B, S), jnp.int32)
    attention_mask = jnp.ones((B, S), jnp.int32).at[1, 6:].set(0)

    fwd = jax.jit(functools.partial(mac_bert_cls_forward, cfg=cfg))
    logits = fwd(pp, input_ids, token_type_ids, attention_mask)
    jax.block_until_ready(logits)

    assert logits.shape == (B, cfg["num_classes"])
    assert bool(jnp.all(jnp.isfinite(logits)))
    print("KERNEL_OK")
</pallas_src>

<mosaic_0001>
module attributes {stable_mosaic.version = 11 : i64} {
  func.func @_layernorm_kernel(%arg0: i32, %arg1: memref<16x32xf32, #tpu.memory_space<vmem>>, %arg2: memref<1x32xf32, #tpu.memory_space<vmem>>, %arg3: memref<1x32xf32, #tpu.memory_space<vmem>>, %arg4: memref<16x32xf32, #tpu.memory_space<vmem>>) attributes {dimension_semantics = [#tpu.dimension_semantics<parallel>], iteration_bounds = array<i64: 1>, scalar_prefetch = 0 : i64, scratch_operands = 0 : i64, tpu.core_type = #tpu.core_type<tc>, window_params = [{transform_indices = @transform_0, window_bounds = array<i64: 16, 32>}, {pipeline_mode = #tpu.pipeline_mode<synchronous>, transform_indices = @transform_1, window_bounds = array<i64: 1, 32>}, {pipeline_mode = #tpu.pipeline_mode<synchronous>, transform_indices = @transform_2, window_bounds = array<i64: 1, 32>}, {transform_indices = @transform_3, window_bounds = array<i64: 16, 32>}]} {
    %c0 = arith.constant 0 : index
    %c0_0 = arith.constant 0 : index
    %0 = vector.load %arg1[%c0, %c0_0] : memref<16x32xf32, #tpu.memory_space<vmem>>, vector<16x32xf32>
    %c0_1 = arith.constant 0 : index
    %c0_2 = arith.constant 0 : index
    %1 = vector.load %arg2[%c0_1, %c0_2] : memref<1x32xf32, #tpu.memory_space<vmem>>, vector<1x32xf32>
    %c0_3 = arith.constant 0 : index
    %c0_4 = arith.constant 0 : index
    %2 = vector.load %arg3[%c0_3, %c0_4] : memref<1x32xf32, #tpu.memory_space<vmem>>, vector<1x32xf32>
    %cst = arith.constant dense<0.000000e+00> : vector<16xf32>
    %3 = vector.multi_reduction <add>, %0, %cst [1] : vector<16x32xf32> to vector<16xf32>
    %4 = vector.shape_cast %3 : vector<16xf32> to vector<16x1xf32>
    %cst_5 = arith.constant 3.200000e+01 : f32
    %5 = vector.broadcast %cst_5 : f32 to vector<16x1xf32>
    %6 = arith.divf %4, %5 : vector<16x1xf32>
    %7 = vector.broadcast %6 : vector<16x1xf32> to vector<16x32xf32>
    %8 = arith.subf %0, %7 : vector<16x32xf32>
    %9 = arith.mulf %8, %8 : vector<16x32xf32>
    %cst_6 = arith.constant dense<0.000000e+00> : vector<16xf32>
    %10 = vector.multi_reduction <add>, %9, %cst_6 [1] : vector<16x32xf32> to vector<16xf32>
    %11 = vector.shape_cast %10 : vector<16xf32> to vector<16x1xf32>
    %cst_7 = arith.constant 3.200000e+01 : f32
    %12 = vector.broadcast %cst_7 : f32 to vector<16x1xf32>
    %13 = arith.divf %11, %12 : vector<16x1xf32>
    %cst_8 = arith.constant 9.99999996E-13 : f32
    %14 = vector.broadcast %cst_8 : f32 to vector<16x1xf32>
    %15 = arith.addf %13, %14 : vector<16x1xf32>
    %16 = math.rsqrt %15 : vector<16x1xf32>
    %17 = vector.broadcast %16 : vector<16x1xf32> to vector<16x32xf32>
    %18 = arith.mulf %8, %17 : vector<16x32xf32>
    %19 = vector.broadcast %1 : vector<1x32xf32> to vector<16x32xf32>
    %20 = arith.mulf %18, %19 : vector<16x32xf32>
    %21 = vector.broadcast %2 : vector<1x32xf32> to vector<16x32xf32>
    %22 = arith.addf %20, %21 : vector<16x32xf32>
    %c0_9 = arith.constant 0 : index
    %c0_10 = arith.constant 0 : index
    %23 = vector.load %arg4[%c0_9, %c0_10] : memref<16x32xf32, #tpu.memory_space<vmem>>, vector<16x32xf32>
    tpu.vector_store %arg4[%c0_9, %c0_10], %22 {strides = array<i32>} : memref<16x32xf32, #tpu.memory_space<vmem>>, vector<16x32xf32>,
    return
  }
  func.func @transform_0(%arg0: i32) -> (i32, i32) {
    %c0_i32 = arith.constant 0 : i32
    %c0_i32_0 = arith.constant 0 : i32
    return %arg0, %c0_i32 : i32, i32
  }
  func.func @transform_1(%arg0: i32) -> (i32, i32) {
    %c0_i32 = arith.constant 0 : i32
    %c0_i32_0 = arith.constant 0 : i32
    %c0_i32_1 = arith.constant 0 : i32
    return %c0_i32, %c0_i32_0 : i32, i32
  }
  func.func @transform_2(%arg0: i32) -> (i32, i32) {
    %c0_i32 = arith.constant 0 : i32
    %c0_i32_0 = arith.constant 0 : i32
    %c0_i32_1 = arith.constant 0 : i32
    return %c0_i32, %c0_i32_0 : i32, i32
  }
  func.func @transform_3(%arg0: i32) -> (i32, i32) {
    %c0_i32 = arith.constant 0 : i32
    %c0_i32_0 = arith.constant 0 : i32
    return %arg0, %c0_i32 : i32, i32
  }
}

module attributes {stable_mosaic.version = 11 : i64} {
  func.func @_attention_kernel(%arg0: i32, %arg1: i32, %arg2: memref<1x8x96xbf16, #tpu.memory_space<vmem>>, %arg3: memref<1x1x8xf32, #tpu.memory_space<vmem>>, %arg4: memref<1x8x32xbf16, #tpu.memory_space<vmem>>) attributes {dimension_semantics = [#tpu.dimension_semantics<parallel>, #tpu.dimension_semantics<parallel>], iteration_bounds = array<i64: 2, 1>, scalar_prefetch = 0 : i64, scratch_operands = 0 : i64, tpu.core_type = #tpu.core_type<tc>, window_params = [{transform_indices = @transform_0, window_bounds = array<i64: 1, 8, 96>}, {transform_indices = @transform_1, window_bounds = array<i64: 1, 1, 8>}, {transform_indices = @transform_2, window_bounds = array<i64: 1, 8, 32>}]} {
    %c8_i32 = arith.constant 8 : i32
    %0 = arith.muli %arg1, %c8_i32 : i32
    %1 = tpu.assume_multiple %0, 8 : i32
    %c0 = arith.constant 0 : index
    %c0_0 = arith.constant 0 : index
    %c0_1 = arith.constant 0 : index
    %2 = vector.load %arg3[%c0, %c0_0, %c0_1] : memref<1x1x8xf32, #tpu.memory_space<vmem>>, vector<1x1x8xf32>
    %3 = vector.shape_cast %2 : vector<1x1x8xf32> to vector<1x8xf32>
    %c0_2 = arith.constant 0 : index
    %4 = arith.index_cast %1 : i32 to index
    %c0_3 = arith.constant 0 : index
    %5 = vector.load %arg2[%c0_2, %4, %c0_3] : memref<1x8x96xbf16, #tpu.memory_space<vmem>>, vector<1x8x16xbf16>
    %6 = vector.shape_cast %5 : vector<1x8x16xbf16> to vector<8x16xbf16>
    %c0_4 = arith.constant 0 : index
    %c0_5 = arith.constant 0 : index
    %c32 = arith.constant 32 : index
    %7 = vector.load %arg2[%c0_4, %c0_5, %c32] : memref<1x8x96xbf16, #tpu.memory_space<vmem>>, vector<1x8x16xbf16>
    %8 = vector.shape_cast %7 : vector<1x8x16xbf16> to vector<8x16xbf16>
    %c0_6 = arith.constant 0 : index
    %c0_7 = arith.constant 0 : index
    %c64 = arith.constant 64 : index
    %9 = vector.load %arg2[%c0_6, %c0_7, %c64] : memref<1x8x96xbf16, #tpu.memory_space<vmem>>, vector<1x8x16xbf16>
    %10 = vector.shape_cast %9 : vector<1x8x16xbf16> to vector<8x16xbf16>
    %cst = arith.constant dense<0.000000e+00> : vector<8x8xf32>
    %11 = tpu.matmul %6, %8, %cst {dimension_numbers = #tpu.dot_dimension_numbers<[1], [1], [0], [0], [0, 0, 1, 0], [], []>} : vector<8x16xbf16>, vector<8x16xbf16>, vector<8x8xf32> -> vector<8x8xf32>
    %cst_8 = arith.constant 2.500000e-01 : f32
    %12 = vector.broadcast %cst_8 : f32 to vector<8x8xf32>
    %13 = arith.mulf %11, %12 : vector<8x8xf32>
    %14 = vector.broadcast %3 : vector<1x8xf32> to vector<8x8xf32>
    %15 = arith.addf %13, %14 : vector<8x8xf32>
    %cst_9 = arith.constant dense<0xFF800000> : vector<8xf32>
    %16 = vector.multi_reduction <maximumf>, %15, %cst_9 [1] : vector<8x8xf32> to vector<8xf32>
    %17 = vector.shape_cast %16 : vector<8xf32> to vector<8x1xf32>
    %18 = vector.broadcast %17 : vector<8x1xf32> to vector<8x8xf32>
    %19 = arith.subf %15, %18 : vector<8x8xf32>
    %20 = math.exp %19 : vector<8x8xf32>
    %cst_10 = arith.constant dense<0.000000e+00> : vector<8xf32>
    %21 = vector.multi_reduction <add>, %20, %cst_10 [1] : vector<8x8xf32> to vector<8xf32>
    %22 = vector.shape_cast %21 : vector<8xf32> to vector<8x1xf32>
    %23 = tpu.reciprocal %22 {approx = true} : vector<8x1xf32> -> vector<8x1xf32>
    %24 = vector.broadcast %23 : vector<8x1xf32> to vector<8x8xf32>
    %25 = arith.mulf %20, %24 : vector<8x8xf32>
    %26 = arith.truncf %25 : vector<8x8xf32> to vector<8x8xbf16>
    %cst_11 = arith.constant dense<0.000000e+00> : vector<8x16xf32>
    %27 = tpu.matmul %26, %10, %cst_11 {dimension_numbers = #tpu.dot_dimension_numbers<[1], [0], [0], [1], [0, 0, 1, 1], [], []>} : vector<8x8xbf16>, vector<8x16xbf16>, vector<8x16xf32> -> vector<8x16xf32>
    %28 = arith.truncf %27 : vector<8x16xf32> to vector<8x16xbf16>
    %c0_12 = arith.constant 0 : index
    %c0_13 = arith.constant 0 : index
    %c0_14 = arith.constant 0 : index
    %29 = vector.load %arg4[%c0_12, %c0_13, %c0_14] : memref<1x8x32xbf16, #tpu.memory_space<vmem>>, vector<1x8x16xbf16>
    %30 = vector.shape_cast %29 : vector<1x8x16xbf16> to vector<8x16xbf16>
    %31 = vector.shape_cast %28 : vector<8x16xbf16> to vector<1x8x16xbf16>
    tpu.vector_store %arg4[%c0_12, %c0_13, %c0_14], %31 {strides = array<i32>} : memref<1x8x32xbf16, #tpu.memory_space<vmem>>, vector<1x8x16xbf16>,
    %c0_15 = arith.constant 0 : index
    %32 = arith.index_cast %1 : i32 to index
    %c16 = arith.constant 16 : index
    %33 = vector.load %arg2[%c0_15, %32, %c16] : memref<1x8x96xbf16, #tpu.memory_space<vmem>>, vector<1x8x16xbf16>
    %34 = vector.shape_cast %33 : vector<1x8x16xbf16> to vector<8x16xbf16>
    %c0_16 = arith.constant 0 : index
    %c0_17 = arith.constant 0 : index
    %c48 = arith.constant 48 : index
    %35 = vector.load %arg2[%c0_16, %c0_17, %c48] : memref<1x8x96xbf16, #tpu.memory_space<vmem>>, vector<1x8x16xbf16>
    %36 = vector.shape_cast %35 : vector<1x8x16xbf16> to vector<8x16xbf16>
    %c0_18 = arith.constant 0 : index
    %c0_19 = arith.constant 0 : index
    %c80 = arith.constant 80 : index
    %37 = vector.load %arg2[%c0_18, %c0_19, %c80] : memref<1x8x96xbf16, #tpu.memory_space<vmem>>, vector<1x8x16xbf16>
    %38 = vector.shape_cast %37 : vector<1x8x16xbf16> to vector<8x16xbf16>
    %cst_20 = arith.constant dense<0.000000e+00> : vector<8x8xf32>
    %39 = tpu.matmul %34, %36, %cst_20 {dimension_numbers = #tpu.dot_dimension_numbers<[1], [1], [0], [0], [0, 0, 1, 0], [], []>} : vector<8x16xbf16>, vector<8x16xbf16>, vector<8x8xf32> -> vector<8x8xf32>
    %cst_21 = arith.constant 2.500000e-01 : f32
    %40 = vector.broadcast %cst_21 : f32 to vector<8x8xf32>
    %41 = arith.mulf %39, %40 : vector<8x8xf32>
    %42 = vector.broadcast %3 : vector<1x8xf32> to vector<8x8xf32>
    %43 = arith.addf %41, %42 : vector<8x8xf32>
    %cst_22 = arith.constant dense<0xFF800000> : vector<8xf32>
    %44 = vector.multi_reduction <maximumf>, %43, %cst_22 [1] : vector<8x8xf32> to vector<8xf32>
    %45 = vector.shape_cast %44 : vector<8xf32> to vector<8x1xf32>
    %46 = vector.broadcast %45 : vector<8x1xf32> to vector<8x8xf32>
    %47 = arith.subf %43, %46 : vector<8x8xf32>
    %48 = math.exp %47 : vector<8x8xf32>
    %cst_23 = arith.constant dense<0.000000e+00> : vector<8xf32>
    %49 = vector.multi_reduction <add>, %48, %cst_23 [1] : vector<8x8xf32> to vector<8xf32>
    %50 = vector.shape_cast %49 : vector<8xf32> to vector<8x1xf32>
    %51 = tpu.reciprocal %50 {approx = true} : vector<8x1xf32> -> vector<8x1xf32>
    %52 = vector.broadcast %51 : vector<8x1xf32> to vector<8x8xf32>
    %53 = arith.mulf %48, %52 : vector<8x8xf32>
    %54 = arith.truncf %53 : vector<8x8xf32> to vector<8x8xbf16>
    %cst_24 = arith.constant dense<0.000000e+00> : vector<8x16xf32>
    %55 = tpu.matmul %54, %38, %cst_24 {dimension_numbers = #tpu.dot_dimension_numbers<[1], [0], [0], [1], [0, 0, 1, 1], [], []>} : vector<8x8xbf16>, vector<8x16xbf16>, vector<8x16xf32> -> vector<8x16xf32>
    %56 = arith.truncf %55 : vector<8x16xf32> to vector<8x16xbf16>
    %c0_25 = arith.constant 0 : index
    %c0_26 = arith.constant 0 : index
    %c16_27 = arith.constant 16 : index
    %57 = vector.load %arg4[%c0_25, %c0_26, %c16_27] : memref<1x8x32xbf16, #tpu.memory_space<vmem>>, vector<1x8x16xbf16>
    %58 = vector.shape_cast %57 : vector<1x8x16xbf16> to vector<8x16xbf16>
    %59 = vector.shape_cast %56 : vector<8x16xbf16> to vector<1x8x16xbf16>
    tpu.vector_store %arg4[%c0_25, %c0_26, %c16_27], %59 {strides = array<i32>} : memref<1x8x32xbf16, #tpu.memory_space<vmem>>, vector<1x8x16xbf16>,
    return
  }
  func.func @transform_0(%arg0: i32, %arg1: i32) -> (i32, i32, i32) {
    %c0_i32 = arith.constant 0 : i32
    %c0_i32_0 = arith.constant 0 : i32
    %c0_i32_1 = arith.constant 0 : i32
    return %arg0, %c0_i32, %c0_i32_0 : i32, i32, i32
  }
  func.func @transform_1(%arg0: i32, %arg1: i32) -> (i32, i32, i32) {
    %c0_i32 = arith.constant 0 : i32
    %c0_i32_0 = arith.constant 0 : i32
    %c0_i32_1 = arith.constant 0 : i32
    return %arg0, %c0_i32, %c0_i32_0 : i32, i32, i32
  }
  func.func @transform_2(%arg0: i32, %arg1: i32) -> (i32, i32, i32) {
    %c0_i32 = arith.constant 0 : i32
    %c0_i32_0 = arith.constant 0 : i32
    return %arg0, %arg1, %c0_i32 : i32, i32, i32
  }
}

module attributes {stable_mosaic.version = 11 : i64} {
  func.func @_linear_res_ln_kernel(%arg0: i32, %arg1: memref<16x32xbf16, #tpu.memory_space<vmem>>, %arg2: memref<32x32xbf16, #tpu.memory_space<vmem>>, %arg3: memref<1x32xf32, #tpu.memory_space<vmem>>, %arg4: memref<16x32xf32, #tpu.memory_space<vmem>>, %arg5: memref<1x32xf32, #tpu.memory_space<vmem>>, %arg6: memref<1x32xf32, #tpu.memory_space<vmem>>, %arg7: memref<16x32xf32, #tpu.memory_space<vmem>>) attributes {dimension_semantics = [#tpu.dimension_semantics<parallel>], iteration_bounds = array<i64: 1>, scalar_prefetch = 0 : i64, scratch_operands = 0 : i64, tpu.core_type = #tpu.core_type<tc>, window_params = [{transform_indices = @transform_0, window_bounds = array<i64: 16, 32>}, {pipeline_mode = #tpu.pipeline_mode<synchronous>, transform_indices = @transform_1, window_bounds = array<i64: 32, 32>}, {pipeline_mode = #tpu.pipeline_mode<synchronous>, transform_indices = @transform_2, window_bounds = array<i64: 1, 32>}, {transform_indices = @transform_3, window_bounds = array<i64: 16, 32>}, {pipeline_mode = #tpu.pipeline_mode<synchronous>, transform_indices = @transform_4, window_bounds = array<i64: 1, 32>}, {pipeline_mode = #tpu.pipeline_mode<synchronous>, transform_indices = @transform_5, window_bounds = array<i64: 1, 32>}, {transform_indices = @transform_6, window_bounds = array<i64: 16, 32>}]} {
    %c0 = arith.constant 0 : index
    %c0_0 = arith.constant 0 : index
    %0 = vector.load %arg1[%c0, %c0_0] : memref<16x32xbf16, #tpu.memory_space<vmem>>, vector<16x32xbf16>
    %c0_1 = arith.constant 0 : index
    %c0_2 = arith.constant 0 : index
    %1 = vector.load %arg2[%c0_1, %c0_2] : memref<32x32xbf16, #tpu.memory_space<vmem>>, vector<32x32xbf16>
    %cst = arith.constant dense<0.000000e+00> : vector<16x32xf32>
    %2 = tpu.matmul %0, %1, %cst {dimension_numbers = #tpu.dot_dimension_numbers<[1], [0], [0], [1], [0, 0, 1, 1], [], []>} : vector<16x32xbf16>, vector<32x32xbf16>, vector<16x32xf32> -> vector<16x32xf32>
    %c0_3 = arith.constant 0 : index
    %c0_4 = arith.constant 0 : index
    %3 = vector.load %arg3[%c0_3, %c0_4] : memref<1x32xf32, #tpu.memory_space<vmem>>, vector<1x32xf32>
    %4 = vector.broadcast %3 : vector<1x32xf32> to vector<16x32xf32>
    %5 = arith.addf %2, %4 : vector<16x32xf32>
    %c0_5 = arith.constant 0 : index
    %c0_6 = arith.constant 0 : index
    %6 = vector.load %arg4[%c0_5, %c0_6] : memref<16x32xf32, #tpu.memory_space<vmem>>, vector<16x32xf32>
    %7 = arith.addf %5, %6 : vector<16x32xf32>
    %c0_7 = arith.constant 0 : index
    %c0_8 = arith.constant 0 : index
    %8 = vector.load %arg5[%c0_7, %c0_8] : memref<1x32xf32, #tpu.memory_space<vmem>>, vector<1x32xf32>
    %c0_9 = arith.constant 0 : index
    %c0_10 = arith.constant 0 : index
    %9 = vector.load %arg6[%c0_9, %c0_10] : memref<1x32xf32, #tpu.memory_space<vmem>>, vector<1x32xf32>
    %cst_11 = arith.constant dense<0.000000e+00> : vector<16xf32>
    %10 = vector.multi_reduction <add>, %7, %cst_11 [1] : vector<16x32xf32> to vector<16xf32>
    %11 = vector.shape_cast %10 : vector<16xf32> to vector<16x1xf32>
    %cst_12 = arith.constant 3.200000e+01 : f32
    %12 = vector.broadcast %cst_12 : f32 to vector<16x1xf32>
    %13 = arith.divf %11, %12 : vector<16x1xf32>
    %14 = vector.broadcast %13 : vector<16x1xf32> to vector<16x32xf32>
    %15 = arith.subf %7, %14 : vector<16x32xf32>
    %16 = arith.mulf %15, %15 : vector<16x32xf32>
    %cst_13 = arith.constant dense<0.000000e+00> : vector<16xf32>
    %17 = vector.multi_reduction <add>, %16, %cst_13 [1] : vector<16x32xf32> to vector<16xf32>
    %18 = vector.shape_cast %17 : vector<16xf32> to vector<16x1xf32>
    %cst_14 = arith.constant 3.200000e+01 : f32
    %19 = vector.broadcast %cst_14 : f32 to vector<16x1xf32>
    %20 = arith.divf %18, %19 : vector<16x1xf32>
    %cst_15 = arith.constant 9.99999996E-13 : f32
    %21 = vector.broadcast %cst_15 : f32 to vector<16x1xf32>
    %22 = arith.addf %20, %21 : vector<16x1xf32>
    %23 = math.rsqrt %22 : vector<16x1xf32>
    %24 = vector.broadcast %23 : vector<16x1xf32> to vector<16x32xf32>
    %25 = arith.mulf %15, %24 : vector<16x32xf32>
    %26 = vector.broadcast %8 : vector<1x32xf32> to vector<16x32xf32>
    %27 = arith.mulf %25, %26 : vector<16x32xf32>
    %28 = vector.broadcast %9 : vector<1x32xf32> to vector<16x32xf32>
    %29 = arith.addf %27, %28 : vector<16x32xf32>
    %c0_16 = arith.constant 0 : index
    %c0_17 = arith.constant 0 : index
    %30 = vector.load %arg7[%c0_16, %c0_17] : memref<16x32xf32, #tpu.memory_space<vmem>>, vector<16x32xf32>
    tpu.vector_store %arg7[%c0_16, %c0_17], %29 {strides = array<i32>} : memref<16x32xf32, #tpu.memory_space<vmem>>, vector<16x32xf32>,
    return
  }
  func.func @transform_0(%arg0: i32) -> (i32, i32) {
    %c0_i32 = arith.constant 0 : i32
    %c0_i32_0 = arith.constant 0 : i32
    return %arg0, %c0_i32 : i32, i32
  }
  func.func @transform_1(%arg0: i32) -> (i32, i32) {
    %c0_i32 = arith.constant 0 : i32
    %c0_i32_0 = arith.constant 0 : i32
    %c0_i32_1 = arith.constant 0 : i32
    return %c0_i32, %c0_i32_0 : i32, i32
  }
  func.func @transform_2(%arg0: i32) -> (i32, i32) {
    %c0_i32 = arith.constant 0 : i32
    %c0_i32_0 = arith.constant 0 : i32
    %c0_i32_1 = arith.constant 0 : i32
    return %c0_i32, %c0_i32_0 : i32, i32
  }
  func.func @transform_3(%arg0: i32) -> (i32, i32) {
    %c0_i32 = arith.constant 0 : i32
    %c0_i32_0 = arith.constant 0 : i32
    return %arg0, %c0_i32 : i32, i32
  }
  func.func @transform_4(%arg0: i32) -> (i32, i32) {
    %c0_i32 = arith.constant 0 : i32
    %c0_i32_0 = arith.constant 0 : i32
    %c0_i32_1 = arith.constant 0 : i32
    return %c0_i32, %c0_i32_0 : i32, i32
  }
  func.func @transform_5(%arg0: i32) -> (i32, i32) {
    %c0_i32 = arith.constant 0 : i32
    %c0_i32_0 = arith.constant 0 : i32
    %c0_i32_1 = arith.constant 0 : i32
    return %c0_i32, %c0_i32_0 : i32, i32
  }
  func.func @transform_6(%arg0: i32) -> (i32, i32) {
    %c0_i32 = arith.constant 0 : i32
    %c0_i32_0 = arith.constant 0 : i32
    return %arg0, %c0_i32 : i32, i32
  }
}

module attributes {stable_mosaic.version = 11 : i64} {
  func.func @_linear_full_kernel(%arg0: i32, %arg1: memref<16x32xf32, #tpu.memory_space<vmem>>, %arg2: memref<32x96xbf16, #tpu.memory_space<vmem>>, %arg3: memref<1x96xf32, #tpu.memory_space<vmem>>, %arg4: memref<16x96xbf16, #tpu.memory_space<vmem>>) attributes {dimension_semantics = [#tpu.dimension_semantics<parallel>], iteration_bounds = array<i64: 1>, scalar_prefetch = 0 : i64, scratch_operands = 0 : i64, tpu.core_type = #tpu.core_type<tc>, window_params = [{transform_indices = @transform_0, window_bounds = array<i64: 16, 32>}, {pipeline_mode = #tpu.pipeline_mode<synchronous>, transform_indices = @transform_1, window_bounds = array<i64: 32, 96>}, {pipeline_mode = #tpu.pipeline_mode<synchronous>, transform_indices = @transform_2, window_bounds = array<i64: 1, 96>}, {transform_indices = @transform_3, window_bounds = array<i64: 16, 96>}]} {
    %c0 = arith.constant 0 : index
    %c0_0 = arith.constant 0 : index
    %0 = vector.load %arg1[%c0, %c0_0] : memref<16x32xf32, #tpu.memory_space<vmem>>, vector<16x32xf32>
    %1 = arith.truncf %0 : vector<16x32xf32> to vector<16x32xbf16>
    %c0_1 = arith.constant 0 : index
    %c0_2 = arith.constant 0 : index
    %2 = vector.load %arg2[%c0_1, %c0_2] : memref<32x96xbf16, #tpu.memory_space<vmem>>, vector<32x96xbf16>
    %cst = arith.constant dense<0.000000e+00> : vector<16x96xf32>
    %3 = tpu.matmul %1, %2, %cst {dimension_numbers = #tpu.dot_dimension_numbers<[1], [0], [0], [1], [0, 0, 1, 1], [], []>} : vector<16x32xbf16>, vector<32x96xbf16>, vector<16x96xf32> -> vector<16x96xf32>
    %c0_3 = arith.constant 0 : index
    %c0_4 = arith.constant 0 : index
    %4 = vector.load %arg3[%c0_3, %c0_4] : memref<1x96xf32, #tpu.memory_space<vmem>>, vector<1x96xf32>
    %5 = vector.broadcast %4 : vector<1x96xf32> to vector<16x96xf32>
    %6 = arith.addf %3, %5 : vector<16x96xf32>
    %7 = arith.truncf %6 : vector<16x96xf32> to vector<16x96xbf16>
    %c0_5 = arith.constant 0 : index
    %c0_6 = arith.constant 0 : index
    %8 = vector.load %arg4[%c0_5, %c0_6] : memref<16x96xbf16, #tpu.memory_space<vmem>>, vector<16x96xbf16>
    tpu.vector_store %arg4[%c0_5, %c0_6], %7 {strides = array<i32>} : memref<16x96xbf16, #tpu.memory_space<vmem>>, vector<16x96xbf16>,
    return
  }
  func.func @transform_0(%arg0: i32) -> (i32, i32) {
    %c0_i32 = arith.constant 0 : i32
    %c0_i32_0 = arith.constant 0 : i32
    return %arg0, %c0_i32 : i32, i32
  }
  func.func @transform_1(%arg0: i32) -> (i32, i32) {
    %c0_i32 = arith.constant 0 : i32
    %c0_i32_0 = arith.constant 0 : i32
    %c0_i32_1 = arith.constant 0 : i32
    return %c0_i32, %c0_i32_0 : i32, i32
  }
  func.func @transform_2(%arg0: i32) -> (i32, i32) {
    %c0_i32 = arith.constant 0 : i32
    %c0_i32_0 = arith.constant 0 : i32
    %c0_i32_1 = arith.constant 0 : i32
    return %c0_i32, %c0_i32_0 : i32, i32
  }
  func.func @transform_3(%arg0: i32) -> (i32, i32) {
    %c0_i32 = arith.constant 0 : i32
    %c0_i32_0 = arith.constant 0 : i32
    return %arg0, %c0_i32 : i32, i32
  }
}

module attributes {stable_mosaic.version = 11 : i64} {
  func.func @_ffn_res_ln_kernel(%arg0: i32, %arg1: i32, %arg2: memref<16x32xf32, #tpu.memory_space<vmem>>, %arg3: memref<32x64xbf16, #tpu.memory_space<vmem>>, %arg4: memref<1x64xf32, #tpu.memory_space<vmem>>, %arg5: memref<64x32xbf16, #tpu.memory_space<vmem>>, %arg6: memref<1x32xf32, #tpu.memory_space<vmem>>, %arg7: memref<1x32xf32, #tpu.memory_space<vmem>>, %arg8: memref<1x32xf32, #tpu.memory_space<vmem>>, %arg9: memref<16x32xf32, #tpu.memory_space<vmem>>, %arg10: memref<16x32xf32, #tpu.memory_space<vmem>>) attributes {dimension_semantics = [#tpu.dimension_semantics<parallel>, #tpu.dimension_semantics<arbitrary>], iteration_bounds = array<i64: 1, 1>, scalar_prefetch = 0 : i64, scratch_operands = 1 : i64, tpu.core_type = #tpu.core_type<tc>, window_params = [{transform_indices = @transform_0, window_bounds = array<i64: 16, 32>}, {transform_indices = @transform_1, window_bounds = array<i64: 32, 64>}, {transform_indices = @transform_2, window_bounds = array<i64: 1, 64>}, {transform_indices = @transform_3, window_bounds = array<i64: 64, 32>}, {pipeline_mode = #tpu.pipeline_mode<synchronous>, transform_indices = @transform_4, window_bounds = array<i64: 1, 32>}, {pipeline_mode = #tpu.pipeline_mode<synchronous>, transform_indices = @transform_5, window_bounds = array<i64: 1, 32>}, {pipeline_mode = #tpu.pipeline_mode<synchronous>, transform_indices = @transform_6, window_bounds = array<i64: 1, 32>}, {transform_indices = @transform_7, window_bounds = array<i64: 16, 32>}]} {
    %c0_i32 = arith.constant 0 : i32
    %0 = arith.cmpi eq, %arg1, %c0_i32 : i32
    %1 = arith.extui %0 : i1 to i32
    %c0_i32_0 = arith.constant 0 : i32
    %2 = arith.cmpi ne, %1, %c0_i32_0 : i32
    scf.if %2 {
      %cst_19 = arith.constant 0.000000e+00 : f32
      %32 = vector.broadcast %cst_19 : f32 to vector<16x32xf32>
      %c0_20 = arith.constant 0 : index
      %c0_21 = arith.constant 0 : index
      %33 = vector.load %arg10[%c0_20, %c0_21] : memref<16x32xf32, #tpu.memory_space<vmem>>, vector<16x32xf32>
      tpu.vector_store %arg10[%c0_20, %c0_21], %32 {strides = array<i32>} : memref<16x32xf32, #tpu.memory_space<vmem>>, vector<16x32xf32>,
    } else {
    }
    %c0 = arith.constant 0 : index
    %c0_1 = arith.constant 0 : index
    %3 = vector.load %arg2[%c0, %c0_1] : memref<16x32xf32, #tpu.memory_space<vmem>>, vector<16x32xf32>
    %4 = arith.truncf %3 : vector<16x32xf32> to vector<16x32xbf16>
    %c0_2 = arith.constant 0 : index
    %c0_3 = arith.constant 0 : index
    %5 = vector.load %arg3[%c0_2, %c0_3] : memref<32x64xbf16, #tpu.memory_space<vmem>>, vector<32x64xbf16>
    %cst = arith.constant dense<0.000000e+00> : vector<16x64xf32>
    %6 = tpu.matmul %4, %5, %cst {dimension_numbers = #tpu.dot_dimension_numbers<[1], [0], [0], [1], [0, 0, 1, 1], [], []>} : vector<16x32xbf16>, vector<32x64xbf16>, vector<16x64xf32> -> vector<16x64xf32>
    %c0_4 = arith.constant 0 : index
    %c0_5 = arith.constant 0 : index
    %7 = vector.load %arg4[%c0_4, %c0_5] : memref<1x64xf32, #tpu.memory_space<vmem>>, vector<1x64xf32>
    %8 = vector.broadcast %7 : vector<1x64xf32> to vector<16x64xf32>
    %9 = arith.addf %6, %8 : vector<16x64xf32>
    %cst_6 = arith.constant 5.000000e-01 : f32
    %10 = vector.broadcast %cst_6 : f32 to vector<16x64xf32>
    %11 = arith.mulf %10, %9 : vector<16x64xf32>
    %cst_7 = arith.constant 4.471500e-02 : f32
    %12 = vector.broadcast %cst_7 : f32 to vector<16x64xf32>
    %13 = arith.mulf %12, %9 : vector<16x64xf32>
    %14 = arith.mulf %13, %9 : vector<16x64xf32>
    %15 = arith.mulf %14, %9 : vector<16x64xf32>
    %16 = arith.addf %9, %15 : vector<16x64xf32>
    %cst_8 = arith.constant 0.797884583 : f32
    %17 = vector.broadcast %cst_8 : f32 to vector<16x64xf32>
    %18 = arith.mulf %17, %16 : vector<16x64xf32>
    %19 = math.tanh %18 : vector<16x64xf32>
    %cst_9 = arith.constant 1.000000e+00 : f32
    %20 = vector.broadcast %cst_9 : f32 to vector<16x64xf32>
    %21 = arith.addf %20, %19 : vector<16x64xf32>
    %22 = arith.mulf %11, %21 : vector<16x64xf32>
    %c0_10 = arith.constant 0 : index
    %c0_11 = arith.constant 0 : index
    %23 = vector.load %arg10[%c0_10, %c0_11] : memref<16x32xf32, #tpu.memory_space<vmem>>, vector<16x32xf32>
    %24 = arith.truncf %22 : vector<16x64xf32> to vector<16x64xbf16>
    %c0_12 = arith.constant 0 : index
    %c0_13 = arith.constant 0 : index
    %25 = vector.load %arg5[%c0_12, %c0_13] : memref<64x32xbf16, #tpu.memory_space<vmem>>, vector<64x32xbf16>
    %cst_14 = arith.constant dense<0.000000e+00> : vector<16x32xf32>
    %26 = tpu.matmul %24, %25, %cst_14 {dimension_numbers = #tpu.dot_dimension_numbers<[1], [0], [0], [1], [0, 0, 1, 1], [], []>} : vector<16x64xbf16>, vector<64x32xbf16>, vector<16x32xf32> -> vector<16x32xf32>
    %27 = arith.addf %23, %26 : vector<16x32xf32>
    %c0_15 = arith.constant 0 : index
    %c0_16 = arith.constant 0 : index
    %28 = vector.load %arg10[%c0_15, %c0_16] : memref<16x32xf32, #tpu.memory_space<vmem>>, vector<16x32xf32>
    tpu.vector_store %arg10[%c0_15, %c0_16], %27 {strides = array<i32>} : memref<16x32xf32, #tpu.memory_space<vmem>>, vector<16x32xf32>,
    %c0_i32_17 = arith.constant 0 : i32
    %29 = arith.cmpi eq, %arg1, %c0_i32_17 : i32
    %30 = arith.extui %29 : i1 to i32
    %c0_i32_18 = arith.constant 0 : i32
    %31 = arith.cmpi ne, %30, %c0_i32_18 : i32
    scf.if %31 {
      %c0_19 = arith.constant 0 : index
      %c0_20 = arith.constant 0 : index
      %32 = vector.load %arg10[%c0_19, %c0_20] : memref<16x32xf32, #tpu.memory_space<vmem>>, vector<16x32xf32>
      %c0_21 = arith.constant 0 : index
      %c0_22 = arith.constant 0 : index
      %33 = vector.load %arg6[%c0_21, %c0_22] : memref<1x32xf32, #tpu.memory_space<vmem>>, vector<1x32xf32>
      %34 = vector.broadcast %33 : vector<1x32xf32> to vector<16x32xf32>
      %35 = arith.addf %32, %34 : vector<16x32xf32>
      %c0_23 = arith.constant 0 : index
      %c0_24 = arith.constant 0 : index
      %36 = vector.load %arg2[%c0_23, %c0_24] : memref<16x32xf32, #tpu.memory_space<vmem>>, vector<16x32xf32>
      %37 = arith.addf %35, %36 : vector<16x32xf32>
      %c0_25 = arith.constant 0 : index
      %c0_26 = arith.constant 0 : index
      %38 = vector.load %arg7[%c0_25, %c0_26] : memref<1x32xf32, #tpu.memory_space<vmem>>, vector<1x32xf32>
      %c0_27 = arith.constant 0 : index
      %c0_28 = arith.constant 0 : index
      %39 = vector.load %arg8[%c0_27, %c0_28] : memref<1x32xf32, #tpu.memory_space<vmem>>, vector<1x32xf32>
      %cst_29 = arith.constant dense<0.000000e+00> : vector<16xf32>
      %40 = vector.multi_reduction <add>, %37, %cst_29 [1] : vector<16x32xf32> to vector<16xf32>
      %41 = vector.shape_cast %40 : vector<16xf32> to vector<16x1xf32>
      %cst_30 = arith.constant 3.200000e+01 : f32
      %42 = vector.broadcast %cst_30 : f32 to vector<16x1xf32>
      %43 = arith.divf %41, %42 : vector<16x1xf32>
      %44 = vector.broadcast %43 : vector<16x1xf32> to vector<16x32xf32>
      %45 = arith.subf %37, %44 : vector<16x32xf32>
      %46 = arith.mulf %45, %45 : vector<16x32xf32>
      %cst_31 = arith.constant dense<0.000000e+00> : vector<16xf32>
      %47 = vector.multi_reduction <add>, %46, %cst_31 [1] : vector<16x32xf32> to vector<16xf32>
      %48 = vector.shape_cast %47 : vector<16xf32> to vector<16x1xf32>
      %cst_32 = arith.constant 3.200000e+01 : f32
      %49 = vector.broadcast %cst_32 : f32 to vector<16x1xf32>
      %50 = arith.divf %48, %49 : vector<16x1xf32>
      %cst_33 = arith.constant 9.99999996E-13 : f32
      %51 = vector.broadcast %cst_33 : f32 to vector<16x1xf32>
      %52 = arith.addf %50, %51 : vector<16x1xf32>
      %53 = math.rsqrt %52 : vector<16x1xf32>
      %54 = vector.broadcast %53 : vector<16x1xf32> to vector<16x32xf32>
      %55 = arith.mulf %45, %54 : vector<16x32xf32>
      %56 = vector.broadcast %38 : vector<1x32xf32> to vector<16x32xf32>
      %57 = arith.mulf %55, %56 : vector<16x32xf32>
      %58 = vector.broadcast %39 : vector<1x32xf32> to vector<16x32xf32>
      %59 = arith.addf %57, %58 : vector<16x32xf32>
      %c0_34 = arith.constant 0 : index
      %c0_35 = arith.constant 0 : index
      %60 = vector.load %arg9[%c0_34, %c0_35] : memref<16x32xf32, #tpu.memory_space<vmem>>, vector<16x32xf32>
      tpu.vector_store %arg9[%c0_34, %c0_35], %59 {strides = array<i32>} : memref<16x32xf32, #tpu.memory_space<vmem>>, vector<16x32xf32>,
    } else {
    }
    return
  }
  func.func @transform_0(%arg0: i32, %arg1: i32) -> (i32, i32) {
    %c0_i32 = arith.constant 0 : i32
    %c0_i32_0 = arith.constant 0 : i32
    return %arg0, %c0_i32 : i32, i32
  }
  func.func @transform_1(%arg0: i32, %arg1: i32) -> (i32, i32) {
    %c0_i32 = arith.constant 0 : i32
    %c0_i32_0 = arith.constant 0 : i32
    return %c0_i32, %arg1 : i32, i32
  }
  func.func @transform_2(%arg0: i32, %arg1: i32) -> (i32, i32) {
    %c0_i32 = arith.constant 0 : i32
    %c0_i32_0 = arith.constant 0 : i32
    return %c0_i32, %arg1 : i32, i32
  }
  func.func @transform_3(%arg0: i32, %arg1: i32) -> (i32, i32) {
    %c0_i32 = arith.constant 0 : i32
    %c0_i32_0 = arith.constant 0 : i32
    return %arg1, %c0_i32 : i32, i32
  }
  func.func @transform_4(%arg0: i32, %arg1: i32) -> (i32, i32) {
    %c0_i32 = arith.constant 0 : i32
    %c0_i32_0 = arith.constant 0 : i32
    %c0_i32_1 = arith.constant 0 : i32
    return %c0_i32, %c0_i32_0 : i32, i32
  }
  func.func @transform_5(%arg0: i32, %arg1: i32) -> (i32, i32) {
    %c0_i32 = arith.constant 0 : i32
    %c0_i32_0 = arith.constant 0 : i32
    %c0_i32_1 = arith.constant 0 : i32
    return %c0_i32, %c0_i32_0 : i32, i32
  }
  func.func @transform_6(%arg0: i32, %arg1: i32) -> (i32, i32) {
    %c0_i32 = arith.constant 0 : i32
    %c0_i32_0 = arith.constant 0 : i32
    %c0_i32_1 = arith.constant 0 : i32
    return %c0_i32, %c0_i32_0 : i32, i32
  }
  func.func @transform_7(%arg0: i32, %arg1: i32) -> (i32, i32) {
    %c0_i32 = arith.constant 0 : i32
    %c0_i32_0 = arith.constant 0 : i32
    return %arg0, %c0_i32 : i32, i32
  }
}

module attributes {stable_mosaic.version = 11 : i64} {
  func.func @_pool_head_kernel(%arg0: i32, %arg1: memref<2x32xf32, #tpu.memory_space<vmem>>, %arg2: memref<32x32xbf16, #tpu.memory_space<vmem>>, %arg3: memref<1x32xf32, #tpu.memory_space<vmem>>, %arg4: memref<32x3xbf16, #tpu.memory_space<vmem>>, %arg5: memref<1x3xf32, #tpu.memory_space<vmem>>, %arg6: memref<2x3xf32, #tpu.memory_space<vmem>>) attributes {dimension_semantics = [#tpu.dimension_semantics<arbitrary>], iteration_bounds = array<i64: 1>, scalar_prefetch = 0 : i64, scratch_operands = 0 : i64, tpu.core_type = #tpu.core_type<tc>, window_params = [{pipeline_mode = #tpu.pipeline_mode<synchronous>, transform_indices = @transform_0, window_bounds = array<i64: 2, 32>}, {pipeline_mode = #tpu.pipeline_mode<synchronous>, transform_indices = @transform_1, window_bounds = array<i64: 32, 32>}, {pipeline_mode = #tpu.pipeline_mode<synchronous>, transform_indices = @transform_2, window_bounds = array<i64: 1, 32>}, {pipeline_mode = #tpu.pipeline_mode<synchronous>, transform_indices = @transform_3, window_bounds = array<i64: 32, 3>}, {pipeline_mode = #tpu.pipeline_mode<synchronous>, transform_indices = @transform_4, window_bounds = array<i64: 1, 3>}, {pipeline_mode = #tpu.pipeline_mode<synchronous>, transform_indices = @transform_5, window_bounds = array<i64: 2, 3>}]} {
    %c0 = arith.constant 0 : index
    %c0_0 = arith.constant 0 : index
    %0 = vector.load %arg1[%c0, %c0_0] : memref<2x32xf32, #tpu.memory_space<vmem>>, vector<2x32xf32>
    %1 = arith.truncf %0 : vector<2x32xf32> to vector<2x32xbf16>
    %c0_1 = arith.constant 0 : index
    %c0_2 = arith.constant 0 : index
    %2 = vector.load %arg2[%c0_1, %c0_2] : memref<32x32xbf16, #tpu.memory_space<vmem>>, vector<32x32xbf16>
    %cst = arith.constant dense<0.000000e+00> : vector<2x32xf32>
    %3 = tpu.matmul %1, %2, %cst {dimension_numbers = #tpu.dot_dimension_numbers<[1], [0], [0], [1], [0, 0, 1, 1], [], []>} : vector<2x32xbf16>, vector<32x32xbf16>, vector<2x32xf32> -> vector<2x32xf32>
    %c0_3 = arith.constant 0 : index
    %c0_4 = arith.constant 0 : index
    %4 = vector.load %arg3[%c0_3, %c0_4] : memref<1x32xf32, #tpu.memory_space<vmem>>, vector<1x32xf32>
    %5 = vector.broadcast %4 : vector<1x32xf32> to vector<2x32xf32>
    %6 = arith.addf %3, %5 : vector<2x32xf32>
    %7 = math.tanh %6 : vector<2x32xf32>
    %8 = arith.truncf %7 : vector<2x32xf32> to vector<2x32xbf16>
    %c0_5 = arith.constant 0 : index
    %c0_6 = arith.constant 0 : index
    %9 = vector.load %arg4[%c0_5, %c0_6] : memref<32x3xbf16, #tpu.memory_space<vmem>>, vector<32x3xbf16>
    %cst_7 = arith.constant dense<0.000000e+00> : vector<2x3xf32>
    %10 = tpu.matmul %8, %9, %cst_7 {dimension_numbers = #tpu.dot_dimension_numbers<[1], [0], [0], [1], [0, 0, 1, 1], [], []>} : vector<2x32xbf16>, vector<32x3xbf16>, vector<2x3xf32> -> vector<2x3xf32>
    %c0_8 = arith.constant 0 : index
    %c0_9 = arith.constant 0 : index
    %11 = vector.load %arg5[%c0_8, %c0_9] : memref<1x3xf32, #tpu.memory_space<vmem>>, vector<1x3xf32>
    %12 = vector.broadcast %11 : vector<1x3xf32> to vector<2x3xf32>
    %13 = arith.addf %10, %12 : vector<2x3xf32>
    %c0_10 = arith.constant 0 : index
    %c0_11 = arith.constant 0 : index
    %14 = vector.load %arg6[%c0_10, %c0_11] : memref<2x3xf32, #tpu.memory_space<vmem>>, vector<2x3xf32>
    tpu.vector_store %arg6[%c0_10, %c0_11], %13 {strides = array<i32>} : memref<2x3xf32, #tpu.memory_space<vmem>>, vector<2x3xf32>,
    return
  }
  func.func @transform_0(%arg0: i32) -> (i32, i32) {
    %c0_i32 = arith.constant 0 : i32
    %c0_i32_0 = arith.constant 0 : i32
    %c0_i32_1 = arith.constant 0 : i32
    return %c0_i32, %c0_i32_0 : i32, i32
  }
  func.func @transform_1(%arg0: i32) -> (i32, i32) {
    %c0_i32 = arith.constant 0 : i32
    %c0_i32_0 = arith.constant 0 : i32
    %c0_i32_1 = arith.constant 0 : i32
    return %c0_i32, %c0_i32_0 : i32, i32
  }
  func.func @transform_2(%arg0: i32) -> (i32, i32) {
    %c0_i32 = arith.constant 0 : i32
    %c0_i32_0 = arith.constant 0 : i32
    %c0_i32_1 = arith.constant 0 : i32
    return %c0_i32, %c0_i32_0 : i32, i32
  }
  func.func @transform_3(%arg0: i32) -> (i32, i32) {
    %c0_i32 = arith.constant 0 : i32
    %c0_i32_0 = arith.constant 0 : i32
    %c0_i32_1 = arith.constant 0 : i32
    return %c0_i32, %c0_i32_0 : i32, i32
  }
  func.func @transform_4(%arg0: i32) -> (i32, i32) {
    %c0_i32 = arith.constant 0 : i32
    %c0_i32_0 = arith.constant 0 : i32
    %c0_i32_1 = arith.constant 0 : i32
    return %c0_i32, %c0_i32_0 : i32, i32
  }
  func.func @transform_5(%arg0: i32) -> (i32, i32) {
    %c0_i32 = arith.constant 0 : i32
    %c0_i32_0 = arith.constant 0 : i32
    %c0_i32_1 = arith.constant 0 : i32
    return %c0_i32, %c0_i32_0 : i32, i32
  }
}

</mosaic_0001>

<bundles_post_ra>
// kernel: mac_bert_cls_forward.2
= control target key start
LH: loop header
LB: loop body
LE: loop exit
PB: predicated region body
PF: predicated region fallthrough
CT: control target
= control target key end

     0   :  { %vm18_vm0 = vcmask 261120   ;;  %s118_s0 = inlined_call_operand.vmem [shape: f32[16,32], index: 0, kind: input, shape index: {}]   ;;  %s119_s1 = inlined_call_operand.vmem [shape: f32[1,32], index: 1, kind: input, shape index: {}]   ;;  %s120_s2 = inlined_call_operand.vmem [shape: f32[1,32], index: 2, kind: input, shape index: {}]   ;;  %s121_s3 = inlined_call_operand.vmem [shape: f32[16,32], index: 3, kind: output, shape index: {}]  }
   0x1   :  { %v14_v0 = vld [vmem:[%s118_s0] sm:$0xff]  ;;  %v15_v1 = vld [vmem:[%s118_s0 + $0x8] sm:$0xff] }
   0x2   :  { %v19_v2 = vsel %vm18_vm0, %v14_v0, 0.0  ;;  %v22_v3 = vsel %vm18_vm0, %v15_v1, 0.0  ;;  %v68_v21 = vld [vmem:[%s119_s1] ss:$0 sm:$0xff] }
   0x3   :  { %20 = vadd.xlane.f32.xlu0 %v19_v2  ;;  %v69_v23 = vld [vmem:[%s120_s2] ss:$0 sm:$0xff] }
   0x7   :  { %23 = vadd.xlane.f32.xlu0 %v22_v3 }
  0x90   :  { %v21_v4 = vpop.xlane.xlu0 %20 }
  0x91   :  { %v26_v5 = vmul.f32 0.03125, %v21_v4 }
  0x93   :  { %v28_v6 = vsub.f32 %v14_v0, %v26_v5 }
  0x94   :  { %v24_v7 = vpop.xlane.xlu0 %23 }
  0x95   :  { %v27_v8 = vmul.f32 0.03125, %v24_v7  ;;  %v30_v9 = vmul.f32 %v28_v6, %v28_v6 }
  0x97   :  { %v29_v10 = vsub.f32 %v15_v1, %v27_v8  ;;  %v32_v11 = vsel %vm18_vm0, %v30_v9, 0.0 }
  0x98   :  { %33 = vadd.xlane.f32.xlu1 %v32_v11 }
  0x99   :  { %v31_v12 = vmul.f32 %v29_v10, %v29_v10 }
  0x9b   :  { %v35_v13 = vsel %vm18_vm0, %v31_v12, 0.0 }
  0x9c   :  { %36 = vadd.xlane.f32.xlu1 %v35_v13 }
 0x125   :  { %v34_v14 = vpop.xlane.xlu1 %33 }
 0x126   :  { %v38_v15 = vmul.f32 0.03125, %v34_v14 }
 0x128   :  { %v40_v16 = vadd.f32 1e-12, %v38_v15 }
 0x129   :  { %v37_v17 = vpop.xlane.xlu1 %36 }
 0x12a   :  { %70 = vrsqrt.f32 %v40_v16  ;;  %v39_v18 = vmul.f32 0.03125, %v37_v17 }
 0x12c   :  { %v41_v19 = vadd.f32 1e-12, %v39_v18 }
 0x12e   :  { %72 = vrsqrt.f32 %v41_v19 }
 0x134   :  { %v71_v20 = vpop.eup %70 }
 0x135   :  { %v44_v22 = vmul.f32 %v71_v20, %v28_v6 }
 0x137   :  { %v52_v24 = vmul.f32 %v68_v21, %v44_v22 }
 0x138   :  { %v73_v25 = vpop.eup %72 }
 0x139   :  { %v60_v26 = vadd.f32 %v69_v23, %v52_v24  ;;  %v45_v27 = vmul.f32 %v73_v25, %v29_v10 }
 0x13b   :  { %62 = vst.msk [vmem:[%s121_s3] sm:$0xff] %vm18_vm0, %v60_v26  ;;  %v53_v28 = vmul.f32 %v68_v21, %v45_v27 }
 0x13d   :  { %v61_v29 = vadd.f32 %v69_v23, %v53_v28 }
 0x13f   :  { %63 = vst.msk [vmem:[%s121_s3 + $0x8] sm:$0xff] %vm18_vm0, %v61_v29 }

// kernel: closed_call.15
= control target key start
LH: loop header
LB: loop body
LE: loop exit
PB: predicated region body
PF: predicated region fallthrough
CT: control target
= control target key end

     0   :  { %v181_v0 = vmov 0.0   ;;  %vm182_vm0 = vmmov 0   ;;  %vm54_vm1 = vcmask 261120   ;;  %s255_s1 = inlined_call_operand.vmem [shape: bf16[32,32], index: 1, kind: input, shape index: {}]   ;;  %s256_s0 = inlined_call_operand.vmem [shape: bf16[16,32], index: 0, kind: input, shape index: {}]   ;;  %s257_s2 = inlined_call_operand.vmem [shape: f32[1,32], index: 2, kind: input, shape index: {}]   ;;  %s258_s3 = inlined_call_operand.vmem [shape: f32[16,32], index: 3, kind: input, shape index: {}]   ;;  %s259_s4 = inlined_call_operand.vmem [shape: f32[1,32], index: 4, kind: input, shape index: {}]   ;;  %s260_s5 = inlined_call_operand.vmem [shape: f32[1,32], index: 5, kind: input, shape index: {}]   ;;  %s261_s6 = inlined_call_operand.vmem [shape: f32[16,32], index: 6, kind: output, shape index: {}]  }
   0x1   :  { %164 = vmatprep.subr.bf16.mxu0 %v181_v0  ;;  %v174_v1 = vld [vmem:[%s255_s1] sm:$0xff]   ;;  %168 = vmatprep.mubr.msk.bf16.mxu0 %vm182_vm0, %v181_v0  ;;  %v175_v2 = vld [vmem:[%s255_s1 + $0x8] sm:$0xff]  }
   0x2   :  { %165 = vmatpush3.bf16.msra.mxu0 %v174_v1  ;;  %v176_v3 = vld [vmem:[%s256_s0] sm:$0xff]   ;;  %v100_v10 = vld [vmem:[%s258_s3 + $0x8] sm:$0xff] }
   0x3   :  { %166 = vmatprep.subr.bf16.mxu0 %v181_v0  ;;  %v154_v4 = vld [vmem:[%s257_s2] ss:$0 sm:$0xff] }
   0x4   :  { %v99_v6 = vld [vmem:[%s258_s3] sm:$0xff] }
   0x5   :  { %v159_v34 = vld [vmem:[%s259_s4] ss:$0 sm:$0xff] }
   0x6   :  { %167 = vmatpush3.bf16.msra.mxu0 %v175_v2  ;;  %v160_v36 = vld [vmem:[%s260_s5] ss:$0 sm:$0xff] }
   0x9   :  { %169 = vmatmul.mubr.msk.bf16.vlgmr.msra.gmra.mrb[0].mxu0 %vm54_vm1, %v176_v3 }
  0xdc   :  { %v92_v5 = vpop.f32.mrb[0].mxu0 }
  0xdd   :  { %v93_v7 = vadd.f32 %v154_v4, %v92_v5  ;;  %v170_v8 = vpop.f32.mrb[1].mxu0 }
  0xde   :  { %v95_v9 = vpop.f32.mrb[2].mxu0 }
  0xdf   :  { %v96_v11 = vadd.f32 %v154_v4, %v95_v9  ;;  %v171_v12 = vpop.f32.mrb[3].mxu0  ;;  %v101_v13 = vadd.f32 %v99_v6, %v93_v7 }
  0xe1   :  { %v105_v14 = vsel %vm54_vm1, %v101_v13, 0.0  ;;  %v102_v15 = vadd.f32 %v100_v10, %v96_v11 }
  0xe2   :  { %106 = vadd.xlane.f32.xlu0 %v105_v14 }
  0xe3   :  { %v108_v16 = vsel %vm54_vm1, %v102_v15, 0.0 }
  0xe6   :  { %109 = vadd.xlane.f32.xlu0 %v108_v16 }
 0x16f   :  { %v107_v17 = vpop.xlane.xlu0 %106 }
 0x170   :  { %v112_v18 = vmul.f32 0.03125, %v107_v17 }
 0x172   :  { %v114_v19 = vsub.f32 %v101_v13, %v112_v18 }
 0x173   :  { %v110_v20 = vpop.xlane.xlu0 %109 }
 0x174   :  { %v113_v21 = vmul.f32 0.03125, %v110_v20  ;;  %v116_v22 = vmul.f32 %v114_v19, %v114_v19 }
 0x176   :  { %v115_v23 = vsub.f32 %v102_v15, %v113_v21  ;;  %v118_v24 = vsel %vm54_vm1, %v116_v22, 0.0 }
 0x177   :  { %119 = vadd.xlane.f32.xlu1 %v118_v24 }
 0x178   :  { %v117_v25 = vmul.f32 %v115_v23, %v115_v23 }
 0x17a   :  { %v121_v26 = vsel %vm54_vm1, %v117_v25, 0.0 }
 0x17b   :  { %122 = vadd.xlane.f32.xlu1 %v121_v26 }
 0x204   :  { %v120_v27 = vpop.xlane.xlu1 %119 }
 0x205   :  { %v124_v28 = vmul.f32 0.03125, %v120_v27 }
 0x207   :  { %v126_v29 = vadd.f32 1e-12, %v124_v28 }
 0x208   :  { %v123_v30 = vpop.xlane.xlu1 %122 }
 0x209   :  { %177 = vrsqrt.f32 %v126_v29  ;;  %v125_v31 = vmul.f32 0.03125, %v123_v30 }
 0x20b   :  { %v127_v32 = vadd.f32 1e-12, %v125_v31 }
 0x20d   :  { %179 = vrsqrt.f32 %v127_v32 }
 0x213   :  { %v178_v33 = vpop.eup %177 }
 0x214   :  { %v130_v35 = vmul.f32 %v178_v33, %v114_v19 }
 0x216   :  { %v138_v37 = vmul.f32 %v159_v34, %v130_v35 }
 0x217   :  { %v180_v38 = vpop.eup %179 }
 0x218   :  { %v146_v39 = vadd.f32 %v160_v36, %v138_v37  ;;  %v131_v40 = vmul.f32 %v180_v38, %v115_v23 }
 0x21a   :  { %148 = vst.msk [vmem:[%s261_s6] sm:$0xff] %vm54_vm1, %v146_v39  ;;  %v139_v41 = vmul.f32 %v159_v34, %v131_v40 }
 0x21c   :  { %v147_v42 = vadd.f32 %v160_v36, %v139_v41 }
 0x21e   :  { %149 = vst.msk [vmem:[%s261_s6 + $0x8] sm:$0xff] %vm54_vm1, %v147_v42 }

// kernel: closed_call.13
= control target key start
LH: loop header
LB: loop body
LE: loop exit
PB: predicated region body
PF: predicated region fallthrough
CT: control target
= control target key end

     0   :  { %v124_v0 = vmov 0.0   ;;  %vm125_vm0 = vmmov 0   ;;  %vm41_vm1 = vcmask 261120   ;;  %vm94_vm2 = vcmask 781312   ;;  %s167_s1 = inlined_call_operand.vmem [shape: bf16[32,96], index: 1, kind: input, shape index: {}]   ;;  %s168_s0 = inlined_call_operand.vmem [shape: f32[16,32], index: 0, kind: input, shape index: {}]   ;;  %s169_s2 = inlined_call_operand.vmem [shape: f32[1,96], index: 2, kind: input, shape index: {}]   ;;  %s170_s3 = inlined_call_operand.vmem [shape: bf16[16,96], index: 3, kind: output, shape index: {}]  }
   0x1   :  { %112 = vmatprep.subr.bf16.mxu0 %v124_v0  ;;  %v122_v1 = vld [vmem:[%s167_s1] sm:$0xff]   ;;  %116 = vmatprep.mubr.msk.bf16.mxu0 %vm125_vm0, %v124_v0  ;;  %v123_v2 = vld [vmem:[%s167_s1 + $0x8] sm:$0xff]  }
   0x2   :  { %113 = vmatpush3.bf16.msra.mxu0 %v122_v1  ;;  %v15_v3 = vld [vmem:[%s168_s0] sm:$0xff]  ;;  %v16_v4 = vld [vmem:[%s168_s0 + $0x8] sm:$0xff] }
   0x3   :  { %114 = vmatprep.subr.bf16.mxu0 %v124_v0  ;;  %v17_v5 = vpack.c.bf16 %v16_v4, %v15_v3  ;;  %v101_v6 = vld [vmem:[%s169_s2] ss:$0 sm:$0xff] }
   0x6   :  { %115 = vmatpush3.bf16.msra.mxu0 %v123_v2 }
   0x9   :  { %117 = vmatmul.mubr.msk.bf16.vlgmr.msra.gmra.mrb[0].mxu0 %vm41_vm1, %v17_v5 }
  0xdc   :  { %v79_v7 = vpop.f32.mrb[0].mxu0 }
  0xdd   :  { %v80_v8 = vadd.f32 %v101_v6, %v79_v7  ;;  %v118_v9 = vpop.f32.mrb[1].mxu0 }
  0xde   :  { %v82_v10 = vpop.f32.mrb[2].mxu0 }
  0xdf   :  { %v107_v11 = vpack.c.bf16 %v80_v8, %v80_v8  ;;  %v83_v12 = vadd.f32 %v101_v6, %v82_v10  ;;  %v119_v13 = vpop.f32.mrb[3].mxu0 }
  0xe1   :  { %95 = vst.msk [vmem:[%s170_s3] sm:$0xf] %vm94_vm2, %v107_v11  ;;  %v108_v14 = vpack.c.bf16 %v83_v12, %v83_v12 }
  0xe3   :  { %96 = vst.msk [vmem:[%s170_s3 + $0x4] sm:$0xf] %vm94_vm2, %v108_v14 }

// kernel: closed_call.14
= control target key start
LH: loop header
LB: loop body
LE: loop exit
PB: predicated region body
PF: predicated region fallthrough
CT: control target
= control target key end

     0   :  { %s659_s9 = smov 0   ;;  %s661_s10 = smov 0   ;;  %s729_s0 = inlined_call_operand.vmem [shape: bf16[2,8,96], index: 0, kind: input, shape index: {}]   ;;  %s730_s1 = inlined_call_operand.vmem [shape: f32[2,1,8], index: 1, kind: input, shape index: {}]   ;;  %s731_s2 = inlined_call_operand.vmem [shape: bf16[2,8,32], index: 2, kind: output, shape index: {}]  }
   0x1   :  { %s663_s11 = smov 0  }
   0x2 LB: > { %s24_s12 = sadd.s32 1, %s630_s10  ;;  %p522_p0 = scmp.ge.s32.totalorder %s634_s11, 1  ;;  %s634_s11 = sphi %s663_s11, %s12_s11   ;;  %s630_s10 = sphi %s661_s10, %s733_s10   ;;  %s626_s9 = sphi %s659_s9, %s732_s9  }
   0x3   : > { %p26_p1 = scmp.ge.s32.totalorder %s24_s12, 2  ;;  %p133_p2 = scmp.lt.s32.totalorder %s634_s11, 3 }
   0x5   : > { %s735_s12 = smov (%p26_p1, %s24_s12), 0  ;;  %p134_p3 = pnand %p522_p0, %p133_p2 }
   0x6   : > { %p159_p4 = scmp.lt.s32.totalorder (!%p134_p3), %s626_s9, 1  ;;  %v636_v0 = vmov (!%p134_p3), 0.0   ;;  %vm637_vm0 = vmmov (!%p134_p3), 0   ;;  %s638_s17 = smov (!%p134_p3), 96   ;;  %vm187_vm1 = vcmask (!%p134_p3), 130048   ;;  %vm242_vm2 = vcmask (!%p134_p3), 64512  }
   0x7   : > { %137 = sbr.rel (%p134_p3) target bundleno = 1543 (0x607), region = 28  ;;  %545 = vmatprep.subr.bf16.mxu0 (!%p134_p3), %v636_v0  ;;  %547 = vmatprep.mubr.msk.bf16.mxu0 (!%p134_p3), %vm637_vm0, %v636_v0  ;;  %s639_s18 = smov (!%p134_p3), 64   ;;  %vm260_vm3 = vcmask (!%p134_p3), 1043456   ;;  %vm305_vm4 = vcmask (!%p134_p3), 125952   ;;  %vm434_vm5 = vcmask (!%p134_p3), 257152  }
   0x8   : > { %551 = vmatprep.subr.bf16.mxu1 (!%p134_p3), %v636_v0  ;;  %553 = vmatprep.mubr.msk.bf16.mxu1 (!%p134_p3), %vm637_vm0, %v636_v0  ;;  %s640_s22 = smov (!%p134_p3), 80   ;;  %s641_s23 = smov (!%p134_p3), 112  }
   0x9   : > { %s642_s27 = smov (!%p134_p3), 48   ;;  %s643_s28 = smov (!%p134_p3), 16  }
   0xe   : > { %s737_s9 = smov (!%p159_p4, %s626_s9), 1 }
   0xf   : > { %s523_s13 = sshll.u32 %s737_s9, 2  ;;  %s165_s21 = scalar_lea.vmem %s730_s1, %s737_s9 }
  0x10   : > { %s687_s16 = scalar_lea.vmem %s729_s0, %s523_s13  ;;  %v527_v6 = vld [vmem:[%s165_s21] ss:$0 sm:$0xff]  ;;  %s712_s26 = scalar_lea.vmem %s731_s2, %s523_s13 }
  0x11   : > { %v601_v1 = vld [vmem:[%s687_s16] ss:$0 sps:$4 sm:$0xff]  }
  0x12   : > { %185 = vrot.lane.b32.xlu0 %v601_v1, %s638_s17  ;;  %v180_v4 = vld [vmem:[%s687_s16] sm:$0xf]  ;;  %255 = vrot.lane.b32.xlu1 %v601_v1, %s639_s18 }
  0x13   : > { %v602_v20 = vld [vmem:[%s687_s16] ss:$0 sps:$4 sm:$0xff]  }
  0x14   : > { %v603_v21 = vld [vmem:[%s687_s16] ss:$0 sps:$4 sm:$0xff]  }
  0x84   : > { %v186_v2 = vpop.permute.xlu0 %185  ;;  %v256_v13 = vpop.permute.xlu1 %255 }
  0x85   : > { %v192_v3 = vsel %vm187_vm1, %v186_v2, 0  ;;  %v262_v14 = vsel %vm260_vm3, %v256_v13, 0 }
  0x86   : > { %546 = vmatpush3.bf16.xpose.msra.mxu0 %v192_v3  ;;  %552 = vmatpush3.bf16.msra.mxu1 %v262_v14 }
  0x87   : > { %563 = vmatprep.subr.bf16.mxu0 %v636_v0  ;;  %557 = vmatprep.subr.bf16.mxu1 %v636_v0 }
  0x8d   : > { %548 = vmatmul.mubr.msk.bf16.vlgmr.msra.gmra.mrb[0].mxu0 %vm187_vm1, %v180_v4 }
  0x8e   : > { %565 = vmatprep.mubr.msk.bf16.mxu0 %vm637_vm0, %v636_v0 }
 0x160   : > { %v228_v5 = vpop.f32.mrb[0].mxu0 }
 0x161   : > { %v234_v7 = vmul.f32 0.25, %v228_v5  ;;  %v549_v8 = vpop.f32.mrb[1].mxu0 }
 0x162   : > { %v231_v9 = vpop.f32.mrb[2].mxu0 }
 0x163   : > { %v550_v10 = vpop.f32.mrb[3].mxu0  ;;  %v241_v11 = vadd.f32 %v527_v6, %v234_v7 }
 0x165   : > { %v243_v12 = vsel %vm242_vm2, %v241_v11, -inf }
 0x166   : > { %244 = vmax.xlane.f32.xlu0 %v243_v12 }
 0x1f3   : > { %v245_v15 = vpop.xlane.xlu0 %244 }
 0x1f4   : > { %v246_v16 = vsub.f32 %v241_v11, %v245_v15 }
 0x1f6   : > { %v247_v17 = vmul.f32 1.442695, %v246_v16 }
 0x1f8   : > { %604 = vpow2.f32 %v247_v17 }
 0x202   : > { %v605_v18 = vpop.eup %604 }
 0x203   : > { %v249_v19 = vsel %vm242_vm2, %v605_v18, 0.0 }
 0x204   : > { %250 = vadd.xlane.f32.xlu1 %v249_v19 }
 0x215   : > { %317 = vrot.lane.b32.xlu1 %v602_v20, %s640_s22 }
 0x219   : > { %312 = vrot.lane.b32.xlu1 %v603_v21, %s641_s23 }
 0x291   : > { %v251_v22 = vpop.xlane.xlu1 %250 }
 0x292   : > { %606 = vrcp.f32 %v251_v22 }
 0x295   : > { %v318_v24 = vpop.permute.xlu1 %317 }
 0x296   : > { %v323_v26 = vsel %vm187_vm1, %v318_v24, 0 }
 0x299   : > { %v313_v28 = vpop.permute.xlu1 %312 }
 0x29c   : > { %v607_v23 = vpop.eup %606 }
 0x29d   : > { %v253_v25 = vmul.f32 %v607_v23, %v605_v18 }
 0x29f   : > { %v254_v27 = vpack.c.bf16 %v253_v25, %v253_v25 }
 0x2a1   : > { %554 = vmatmul.mubr.msk.bf16.vlgmr.msra.gmra.mrb[0].mxu1 %vm242_vm2, %v254_v27 }
 0x2a2   : > { %558 = vmatpush3.bf16.xpose.msra.mxu1 %v323_v26  ;;  %559 = vmatprep.mubr.msk.bf16.mxu1 %vm637_vm0, %v636_v0 }
 0x2a9   : > { %560 = vmatmul.mubr.msk.bf16.vlgmr.msra.gmra.mrb[4].mxu1 %vm187_vm1, %v313_v28 }
 0x374   : > { %v298_v29 = vpop.f32.mrb[0].mxu1 }
 0x375   : > { %v304_v30 = vpack.c.bf16 %v298_v29, %v298_v29  ;;  %v555_v31 = vpop.f32.mrb[1].mxu1 }
 0x376   : > { %v301_v32 = vpop.f32.mrb[2].mxu1 }
 0x377   : > { %306 = vst.msk [vmem:[%s712_s26] sm:$0xf] %vm305_vm4, %v304_v30  ;;  %v556_v33 = vpop.f32.mrb[3].mxu1 }
 0x37c   : > { %v359_v34 = vpop.f32.mrb[4].mxu1 }
 0x37d   : > { %v365_v35 = vmul.f32 0.25, %v359_v34  ;;  %v561_v36 = vpop.f32.mrb[5].mxu1 }
 0x37e   : > { %v362_v37 = vpop.f32.mrb[6].mxu1 }
 0x37f   : > { %v562_v38 = vpop.f32.mrb[7].mxu1  ;;  %v366_v39 = vadd.f32 %v527_v6, %v365_v35 }
 0x381   : > { %v367_v40 = vsel %vm242_vm2, %v366_v39, -inf }
 0x382   : > { %368 = vmax.xlane.f32.xlu1 %v367_v40 }
 0x40f   : > { %v369_v41 = vpop.xlane.xlu1 %368 }
 0x410   : > { %v370_v42 = vsub.f32 %v366_v39, %v369_v41 }
 0x412   : > { %v371_v43 = vmul.f32 1.442695, %v370_v42 }
 0x414   : > { %608 = vpow2.f32 %v371_v43 }
 0x41e   : > { %v609_v44 = vpop.eup %608 }
 0x41f   : > { %v373_v45 = vsel %vm242_vm2, %v609_v44, 0.0 }
 0x420   : > { %374 = vadd.xlane.f32.xlu0 %v373_v45 }
 0x436   : > { %379 = vrot.lane.b32.xlu0 %v602_v20, %s642_s27 }
 0x4ad   : > { %v375_v46 = vpop.xlane.xlu0 %374 }
 0x4ae   : > { %610 = vrcp.f32 %v375_v46 }
 0x4b1   : > { %v380_v47 = vpop.permute.xlu0 %379 }
 0x4b2   : > { %v385_v48 = vsel %vm260_vm3, %v380_v47, 0 }
 0x4b3   : > { %564 = vmatpush3.bf16.msra.mxu0 %v385_v48 }
 0x4b8   : > { %v611_v49 = vpop.eup %610 }
 0x4b9   : > { %v377_v50 = vmul.f32 %v611_v49, %v609_v44 }
 0x4bb   : > { %v378_v51 = vpack.c.bf16 %v377_v50, %v377_v50 }
 0x4bd   : > { %566 = vmatmul.mubr.msk.bf16.vlgmr.msra.gmra.mrb[4].mxu0 %vm242_vm2, %v378_v51 }
 0x590   : > { %v421_v52 = vpop.f32.mrb[4].mxu0 }
 0x591   : > { %v536_v53 = vpack.c.bf16 %v421_v52, %v421_v52  ;;  %v567_v54 = vpop.f32.mrb[5].mxu0 }
 0x592   : > { %v424_v55 = vpop.f32.mrb[6].mxu0 }
 0x593   : > { %431 = vrot.lane.b32.xlu0 %v536_v53, %s643_s28  ;;  %v568_v56 = vpop.f32.mrb[7].mxu0 }
 0x605   : > { %v432_v57 = vpop.permute.xlu0 %431 }
 0x606   : > { %435 = vst.msk [vmem:[%s712_s26] sm:$0xf] %vm434_vm5, %v432_v57 }
 0x607 PF: > { %s12_s11 = sadd.s32 1, %s634_s11   ;;  %s732_s9 = smov %s630_s10 }
 0x608   : > { %p9_p5 = scmp.ge.s32.totalorder %s12_s11, 4   ;;  %s733_s10 = smov %s735_s12 }
 0x60a   :  { %11 = sbr.rel (!%p9_p5) target bundleno = 2 (0x2), region = 62 }

// kernel: closed_call.16
= control target key start
LH: loop header
LB: loop body
LE: loop exit
PB: predicated region body
PF: predicated region fallthrough
CT: control target
= control target key end

     0   :  { %vm31_vm0 = vcmask 261120   ;;  %v332_v0 = vmov 0.0   ;;  %vm333_vm1 = vmmov 0   ;;  %vm158_vm2 = vcmask 523264   ;;  %s435_s1 = inlined_call_operand.vmem [shape: bf16[32,64], index: 1, kind: input, shape index: {}]   ;;  %s436_s0 = inlined_call_operand.vmem [shape: f32[16,32], index: 0, kind: input, shape index: {}]   ;;  %s437_s3 = inlined_call_operand.vmem [shape: bf16[64,32], index: 3, kind: input, shape index: {}]   ;;  %s438_s2 = inlined_call_operand.vmem [shape: f32[1,64], index: 2, kind: input, shape index: {}]   ;;  %s439_s4 = inlined_call_operand.vmem [shape: f32[1,32], index: 4, kind: input, shape index: {}]   ;;  %s440_s5 = inlined_call_operand.vmem [shape: f32[1,32], index: 5, kind: input, shape index: {}]   ;;  %s441_s6 = inlined_call_operand.vmem [shape: f32[1,32], index: 6, kind: input, shape index: {}]   ;;  %s442_s7 = inlined_call_operand.vmem [shape: f32[16,32], index: 7, kind: output, shape index: {}]  }
   0x1   :  { %296 = vmatprep.subr.bf16.mxu0 %v332_v0  ;;  %v318_v1 = vld [vmem:[%s435_s1] sm:$0xff]   ;;  %300 = vmatprep.mubr.msk.bf16.mxu0 %vm333_vm1, %v332_v0  ;;  %32 = vst.msk [vmem:[#allocation2] sm:$0xff] %vm31_vm0, %v332_v0  ;;  %33 = vst.msk [vmem:[#allocation2 + $0x8] sm:$0xff] %vm31_vm0, %v332_v0  ;;  %v319_v2 = vld [vmem:[%s435_s1 + $0x8] sm:$0xff]  }
   0x2   :  { %304 = vmatprep.subr.bf16.mxu1 %v332_v0  ;;  %312 = vmatprep.mubr.msk.bf16.mxu1 %vm333_vm1, %v332_v0  ;;  %v385_v3 = vld [vmem:[%s436_s0] sm:$0xff]  ;;  %v390_v4 = vld [vmem:[%s436_s0 + $0x8] sm:$0xff]  ;;  %v322_v8 = vld [vmem:[%s437_s3 + $0x10] sm:$0xff]  }
   0x3   :  { %297 = vmatpush3.bf16.msra.mxu0 %v318_v1  ;;  %v36_v5 = vpack.c.bf16 %v390_v4, %v385_v3  ;;  %v320_v6 = vld [vmem:[%s437_s3] sm:$0xff]   ;;  %v321_v7 = vld [vmem:[%s437_s3 + $0x8] sm:$0xff]   ;;  %v323_v9 = vld [vmem:[%s437_s3 + $0x18] sm:$0xff]  }
   0x4   :  { %298 = vmatprep.subr.bf16.mxu0 %v332_v0  ;;  %305 = vmatpush3.bf16.msra.mxu1 %v320_v6  ;;  %v276_v10 = vld [vmem:[%s438_s2] ss:$0 sm:$0xff] }
   0x5   :  { %306 = vmatprep.subr.bf16.mxu1 %v332_v0  ;;  %v285_v44 = vld [vmem:[%s439_s4] ss:$0 sm:$0xff] }
   0x6   :  { %v286_v6 = vld [vmem:[%s440_s5] ss:$0 sm:$0xff] }
   0x7   :  { %299 = vmatpush3.bf16.msra.mxu0 %v319_v2 }
   0x8   :  { %307 = vmatpush3.bf16.msra.mxu1 %v321_v7  ;;  %v123_v36 = vld [vmem:[#allocation2] sm:$0xff]  ;;  %v124_v38 = vld [vmem:[#allocation2 + $0x8] sm:$0xff] }
   0x9   :  { %308 = vmatprep.subr.bf16.mxu1 %v332_v0 }
   0xa   :  { %301 = vmatmul.mubr.msk.bf16.vlgmr.msra.gmra.mrb[0].mxu0 %vm31_vm0, %v36_v5 }
   0xc   :  { %309 = vmatpush3.bf16.msra.mxu1 %v322_v8  ;;  %v287_v8 = vld [vmem:[%s441_s6] ss:$0 sm:$0xff] }
   0xd   :  { %310 = vmatprep.subr.bf16.mxu1 %v332_v0 }
  0x10   :  { %311 = vmatpush3.bf16.msra.mxu1 %v323_v9 }
  0xdd   :  { %v98_v11 = vpop.f32.mrb[0].mxu0 }
  0xde   :  { %v99_v12 = vadd.f32 %v276_v10, %v98_v11  ;;  %v302_v13 = vpop.f32.mrb[1].mxu0 }
  0xdf   :  { %v101_v14 = vpop.f32.mrb[2].mxu0 }
  0xe0   :  { %v107_v15 = vmul.f32 0.044715, %v99_v12  ;;  %v102_v16 = vadd.f32 %v276_v10, %v101_v14  ;;  %v303_v17 = vpop.f32.mrb[3].mxu0  ;;  %v105_v30 = vmul.f32 0.5, %v99_v12 }
  0xe2   :  { %v109_v18 = vmul.f32 %v107_v15, %v99_v12  ;;  %v108_v19 = vmul.f32 0.044715, %v102_v16  ;;  %v106_v31 = vmul.f32 0.5, %v102_v16 }
  0xe4   :  { %v111_v20 = vmul.f32 %v109_v18, %v99_v12  ;;  %v110_v21 = vmul.f32 %v108_v19, %v102_v16 }
  0xe6   :  { %v113_v22 = vadd.f32 %v111_v20, %v99_v12  ;;  %v112_v23 = vmul.f32 %v110_v21, %v102_v16 }
  0xe8   :  { %v115_v24 = vmul.f32 0.7978846, %v113_v22  ;;  %v114_v25 = vadd.f32 %v112_v23, %v102_v16 }
  0xea   :  { %324 = vtanh.f32 %v115_v24  ;;  %v116_v26 = vmul.f32 0.7978846, %v114_v25 }
  0xec   :  { %326 = vtanh.f32 %v116_v26 }
  0xf4   :  { %v325_v27 = vpop.eup %324 }
  0xf5   :  { %v119_v28 = vadd.f32 1.0, %v325_v27 }
  0xf6   :  { %v327_v29 = vpop.eup %326 }
  0xf7   :  { %v120_v32 = vadd.f32 1.0, %v327_v29  ;;  %v121_v33 = vmul.f32 %v119_v28, %v105_v30 }
  0xf9   :  { %v122_v34 = vmul.f32 %v120_v32, %v106_v31 }
  0xfb   :  { %v125_v35 = vpack.c.bf16 %v122_v34, %v121_v33 }
  0xfd   :  { %313 = vmatmul.mubr.msk.bf16.vlgmr.msra.gmra.mrb[0].mxu1 %vm158_vm2, %v125_v35 }
 0x1d0   :  { %v196_v37 = vpop.f32.mrb[0].mxu1 }
 0x1d1   :  { %v203_v39 = vadd.f32 %v196_v37, %v123_v36  ;;  %v314_v40 = vpop.f32.mrb[1].mxu1 }
 0x1d2   :  { %v199_v41 = vpop.f32.mrb[2].mxu1 }
 0x1d3   :  { %205 = vst.msk [vmem:[#allocation2] sm:$0xff] %vm31_vm0, %v203_v39  ;;  %v204_v42 = vadd.f32 %v199_v41, %v124_v38  ;;  %v315_v43 = vpop.f32.mrb[3].mxu1 }
 0x1d5   :  { %206 = vst.msk [vmem:[#allocation2 + $0x8] sm:$0xff] %vm31_vm0, %v204_v42 }
 0x1da   :  { %v210_v45 = vld [vmem:[#allocation2] sm:$0xff] }
 0x1db   :  { %v219_v46 = vadd.f32 %v285_v44, %v210_v45 }
 0x1dc   :  { %v211_v47 = vld [vmem:[#allocation2 + $0x8] sm:$0xff] }
 0x1dd   :  { %v223_v48 = vadd.f32 %v219_v46, %v385_v3  ;;  %v220_v49 = vadd.f32 %v285_v44, %v211_v47 }
 0x1df   :  { %v227_v50 = vsel %vm31_vm0, %v223_v48, 0.0  ;;  %v224_v51 = vadd.f32 %v220_v49, %v390_v4 }
 0x1e0   :  { %228 = vadd.xlane.f32.xlu0 %v227_v50 }
 0x1e1   :  { %v230_v52 = vsel %vm31_vm0, %v224_v51, 0.0 }
 0x1e4   :  { %231 = vadd.xlane.f32.xlu0 %v230_v52 }
 0x26d   :  { %v229_v53 = vpop.xlane.xlu0 %228 }
 0x26e   :  { %v234_v54 = vmul.f32 0.03125, %v229_v53 }
 0x270   :  { %v236_v55 = vsub.f32 %v223_v48, %v234_v54 }
 0x271   :  { %v232_v56 = vpop.xlane.xlu0 %231 }
 0x272   :  { %v235_v57 = vmul.f32 0.03125, %v232_v56  ;;  %v238_v58 = vmul.f32 %v236_v55, %v236_v55 }
 0x274   :  { %v237_v59 = vsub.f32 %v224_v51, %v235_v57  ;;  %v240_v60 = vsel %vm31_vm0, %v238_v58, 0.0 }
 0x275   :  { %241 = vadd.xlane.f32.xlu1 %v240_v60 }
 0x276   :  { %v239_v61 = vmul.f32 %v237_v59, %v237_v59 }
 0x278   :  { %v243_v62 = vsel %vm31_vm0, %v239_v61, 0.0 }
 0x279   :  { %244 = vadd.xlane.f32.xlu1 %v243_v62 }
 0x302   :  { %v242_v63 = vpop.xlane.xlu1 %241 }
 0x303   :  { %v246_v0 = vmul.f32 0.03125, %v242_v63 }
 0x305   :  { %v248_v1 = vadd.f32 1e-12, %v246_v0 }
 0x306   :  { %v245_v2 = vpop.xlane.xlu1 %244 }
 0x307   :  { %328 = vrsqrt.f32 %v248_v1  ;;  %v247_v3 = vmul.f32 0.03125, %v245_v2 }
 0x309   :  { %v249_v4 = vadd.f32 1e-12, %v247_v3 }
 0x30b   :  { %330 = vrsqrt.f32 %v249_v4 }
 0x311   :  { %v329_v5 = vpop.eup %328 }
 0x312   :  { %v252_v7 = vmul.f32 %v329_v5, %v236_v55 }
 0x314   :  { %v260_v9 = vmul.f32 %v286_v6, %v252_v7 }
 0x315   :  { %v331_v10 = vpop.eup %330 }
 0x316   :  { %v268_v11 = vadd.f32 %v287_v8, %v260_v9  ;;  %v253_v12 = vmul.f32 %v331_v10, %v237_v59 }
 0x318   :  { %270 = vst.msk [vmem:[%s442_s7] sm:$0xff] %vm31_vm0, %v268_v11  ;;  %v261_v13 = vmul.f32 %v286_v6, %v253_v12 }
 0x31a   :  { %v269_v14 = vadd.f32 %v287_v8, %v261_v13 }
 0x31c   :  { %271 = vst.msk [vmem:[%s442_s7 + $0x8] sm:$0xff] %vm31_vm0, %v269_v14 }

// kernel: mac_bert_cls_forward.3
= control target key start
LH: loop header
LB: loop body
LE: loop exit
PB: predicated region body
PF: predicated region fallthrough
CT: control target
= control target key end

     0   :  { %v238_v1 = vmov 0.0   ;;  %vm239_vm0 = vmmov 0   ;;  %s306_s0 = inlined_call_operand.vmem [shape: f32[2,32], index: 0, kind: input, shape index: {}]   ;;  %s307_s1 = inlined_call_operand.vmem [shape: bf16[32,32], index: 1, kind: input, shape index: {}]   ;;  %s308_s2 = inlined_call_operand.vmem [shape: f32[1,32], index: 2, kind: input, shape index: {}]   ;;  %s309_s3 = inlined_call_operand.vmem [shape: bf16[32,3], index: 3, kind: input, shape index: {}]   ;;  %s310_s4 = inlined_call_operand.vmem [shape: f32[1,3], index: 4, kind: input, shape index: {}]   ;;  %s311_s5 = inlined_call_operand.hbm [shape: f32[2,3], index: 5, kind: output, shape index: {}]  }
   0x1   :  { %v208_v0 = vld [vmem:[%s307_s1] sm:$0xff]   ;;  %189 = vmatprep.subr.bf16.mxu0 %v238_v1  ;;  %197 = vmatprep.subr.bf16.mxu1 %v238_v1  ;;  %v209_v2 = vld [vmem:[%s307_s1 + $0x8] sm:$0xff]  }
   0x2   :  { %190 = vmatpush3.bf16.msra.mxu0 %v208_v0  ;;  %193 = vmatprep.mubr.msk.bf16.mxu0 %vm239_vm0, %v238_v1  ;;  %v22_v3 = vld [vmem:[%s306_s0] sm:$0x3] }
   0x3   :  { %191 = vmatprep.subr.bf16.mxu0 %v238_v1  ;;  %201 = vmatprep.mubr.msk.bf16.mxu1 %vm239_vm0, %v238_v1 }
   0x4   :  { %10 = vsyncpa [#allocation3], 0  ;;  %v23_v4 = vpack.c.bf16 %v22_v3, %v22_v3  ;;  %vm47_vm1 = vcmask 261120   ;;  %v210_v5 = vld [vmem:[%s309_s3] sm:$0xff]   ;;  %v211_v6 = vld [vmem:[%s309_s3 + $0x8] sm:$0xff]   ;;  %s240_s3 = smov [#allocation2]  }
   0x5   :  { %198 = vmatpush3.bf16.msra.mxu1 %v210_v5  ;;  %v175_v7 = vld [vmem:[%s308_s2] ss:$0 sm:$0xff]  ;;  %s167_s30 = sshll.u32 %s240_s3, 4  ;;  %vm159_vm2 = vcmask 17408   ;;  %s168_s30 = int_to_ptr.vmem [resolvable:$true] %s167_s30 }
   0x6   :  { %192 = vmatpush3.bf16.msra.mxu0 %v209_v2  ;;  %199 = vmatprep.subr.bf16.mxu1 %v238_v1  ;;  %v179_v15 = vld [vmem:[%s310_s4] ss:$0 sm:$0xff]  ;;  %s214_s2 = scalar_lea.vmem %s168_s30, 32  ;;  %p219_p1 = scmp.lt.s32.totalorder %s168_s30, %s168_s30 }
   0x7   :  { %p215_p0 = scmp.ne.s32.totalorder %s168_s30, %s214_s2  ;;  %p220_p2 = scmp.lt.s32.totalorder %s214_s2, %s214_s2 }
   0x9   :  { %194 = vmatmul.mubr.msk.bf16.vlgmr.msra.gmra.mrb[0].mxu0 %vm47_vm1, %v23_v4  ;;  %200 = vmatpush3.bf16.msra.mxu1 %v211_v6  ;;  %p221_p3 = por %p220_p2, %p219_p1 }
   0xb   :  { %p222_p4 = pnand %p221_p3, %p215_p0 }
  0xdc   :  { %v85_v8 = vpop.f32.mrb[0].mxu0 }
  0xdd   :  { %v86_v9 = vadd.f32 %v175_v7, %v85_v8  ;;  %v195_v10 = vpop.f32.mrb[1].mxu0 }
  0xde   :  { %v88_v11 = vpop.f32.mrb[2].mxu0 }
  0xdf   :  { %212 = vtanh.f32 %v86_v9  ;;  %v196_v12 = vpop.f32.mrb[3].mxu0 }
  0xe9   :  { %v213_v13 = vpop.eup %212 }
  0xea   :  { %v92_v14 = vpack.c.bf16 %v213_v13, %v213_v13 }
  0xec   :  { %202 = vmatmul.mubr.msk.bf16.vlgmr.msra.gmra.mrb[0].mxu1 %vm47_vm1, %v92_v14 }
 0x1bf   :  { %v153_v16 = vpop.f32.mrb[0].mxu1 }
 0x1c0   :  { %v154_v17 = vadd.f32 %v179_v15, %v153_v16  ;;  %v203_v18 = vpop.f32.mrb[1].mxu1 }
 0x1c1   :  { %v156_v19 = vpop.f32.mrb[2].mxu1 }
 0x1c2   :  { %v204_v20 = vpop.f32.mrb[3].mxu1  ;;  %160 = vst.msk [vmem:[#allocation2] sm:$0x3] %vm159_vm2, %v154_v17 }
 0x1c3   :  { %225 = shalt.err (!%p222_p4)
}
 0x1c4   :  { %s226_s4 = scalar_lea.hbm %s311_s5, 32 }
 0x1c5   :  { %p227_p5 = scmp.ne.s32.totalorder %s311_s5, %s226_s4  ;;  %p230_p6 = scmp.lt.u32.totalorder %s226_s4, %s311_s5 }
 0x1c7   :  { %p232_p7 = pnand %p230_p6, %p227_p5 }
 0x1c9   :  { %235 = shalt.err (!%p232_p7)
}
 0x1ca   :  { %170 = dma.vmem_to_hbm [thread:$0]  %s168_s30, 32, %s311_s5, [#allocation3]  }
 0x1cb   :  { %236 = dma.done.wait [#allocation3], 32  }
 0x1cc   :  { %237 = vsyncadd [#allocation3], 4294967264 }
 0x1cd   :  { %174 = vsyncpa [#allocation3], 1 }

</bundles_post_ra>
